<compile_context>
chip_gen: v5e
topology: v5e:2x2
jax: 0.10.0
libtpu: 0.0.40
codegen_flags: <defaults>
</compile_context>

<pallas_src>
import math
from functools import partial

import jax
import jax.numpy as jnp
from jax.experimental import pallas as pl
from jax.experimental.pallas import tpu as pltpu


def _round_up(x, m):
    return (x + m - 1) // m * m


def _pick_k_tile(K):
    """K tiling: multiple of 128; single K step whenever K128 <= 2048,
    otherwise the largest divisor of K128 from the candidate list."""
    K128 = _round_up(K, 128)
    if K128 <= 2048:
        return K128, K128
    for tk in (2048, 1920, 1792, 1664, 1536, 1408, 1280, 1152, 1024,
               896, 768, 640, 512, 384, 256, 128):
        if K128 % tk == 0:
            return tk, K128
    return 512, _round_up(K128, 512)          # unreachable (128 divides K128)


# --------------------------------------------------------------------------
# Pallas kernel: (M,N,K)-tiled GEMM, bf16 operands, f32 VMEM accumulator,
# fused bias (via accumulator init) + optional residual add + optional ReLU,
# bf16 output written once in the last-K epilogue.
# --------------------------------------------------------------------------
def _mm_kernel(x_ref, w_ref, b_ref, *rest, act, has_res):
    if has_res:
        res_ref, o_ref, acc_ref = rest
    else:
        o_ref, acc_ref = rest

    k = pl.program_id(2)

    @pl.when(k == 0)
    def _():
        # start the accumulator at the (broadcast) bias: no epilogue "+ b"
        acc_ref[...] = jnp.zeros_like(acc_ref) + b_ref[...]

    acc_ref[...] += jnp.dot(x_ref[...], w_ref[...],
                            preferred_element_type=jnp.float32)

    @pl.when(k == pl.num_programs(2) - 1)
    def _():
        r = acc_ref[...]
        if has_res:                              # residual added before the act
            r = r + res_ref[...].astype(jnp.float32)
        if act == "relu":
            r = jnp.maximum(r, 0.0)
        o_ref[...] = r.astype(o_ref.dtype)


def matmul_prepared(x, wp, bp, meta, act="none", residual=None):
    """(M,K)@(K,N) + b (+residual, +ReLU).  x is bf16 (M,K); wp/bp are the
    pre-packed (Kp,Np) bf16 weight and (1,Np) f32 bias.  Returns bf16 (M,N)."""
    M, K = x.shape
    N, tk, tn = meta["N"], meta["tk"], meta["tn"]
    Kp, Np = meta["Kp"], meta["Np"]
    assert K == meta["K"] and wp.shape == (Kp, Np)

    tm = min(512, _round_up(M, 16))

    # keep double-buffered tiles + accumulator inside a conservative budget
    def vmem_bytes(tm_):
        return (2 * tm_ * tk * 2 + 2 * tk * tn * 2 + 2 * tm_ * tn * 2
                + 2 * tm_ * tn * 2 + tm_ * tn * 4)
    while vmem_bytes(tm) > 24 * 1024 * 1024 and tm > 64:
        tm //= 2
    Mp = _round_up(M, tm)

    # v7x: make sure the "parallel" M x N grid has >= 2 tiles so both
    # TensorCores get work (harmless extra grid step on 1-TC v5e/v6e).
    if (Mp // tm) * (Np // tn) == 1 and tm >= 32 and tm % 32 == 0:
        tm //= 2
        Mp = _round_up(M, tm)

    xp = x if x.dtype == jnp.bfloat16 else x.astype(jnp.bfloat16)
    if (Mp, Kp) != (M, K):
        xp = jnp.pad(xp, ((0, Mp - M), (0, Kp - K)))

    in_specs = [
        pl.BlockSpec((tm, tk), lambda i, j, k: (i, k)),
        pl.BlockSpec((tk, tn), lambda i, j, k: (k, j)),
        pl.BlockSpec((1, tn), lambda i, j, k: (0, j)),
    ]
    args = [xp, wp, bp]

    has_res = residual is not None
    if has_res:
        rp = residual.astype(jnp.bfloat16)
        if rp.shape != (Mp, Np):
            rp = jnp.pad(rp, ((0, Mp - rp.shape[0]), (0, Np - rp.shape[1])))
        in_specs.append(pl.BlockSpec((tm, tn), lambda i, j, k: (i, j)))
        args.append(rp)

    out = pl.pallas_call(
        partial(_mm_kernel, act=act, has_res=has_res),
        out_shape=jax.ShapeDtypeStruct((Mp, Np), jnp.bfloat16),
        grid_spec=pltpu.PrefetchScalarGridSpec(
            num_scalar_prefetch=0,
            grid=(Mp // tm, Np // tn, Kp // tk),
            in_specs=in_specs,
            out_specs=pl.BlockSpec((tm, tn), lambda i, j, k: (i, j)),
            scratch_shapes=[pltpu.VMEM((tm, tn), jnp.float32)],
        ),
        compiler_params=pltpu.CompilerParams(
            dimension_semantics=("parallel", "parallel", "arbitrary"),
            vmem_limit_bytes=32 * 1024 * 1024),
    )(*args)

    if (Mp, Np) != (M, N):
        out = out[:M, :N]
    return out


# --------------------------------------------------------------------------
# one-time weight packing (outside the per-call / jit-traced path)
# --------------------------------------------------------------------------
def _prep_conv(w, b):
    """Pack (KH,KW,Cin,Cout) weight + bias into bf16 GEMM-layout, tile-padded
    matrices.  Returns (arrays, static_meta)."""
    KH, KW, Cin, Cout = map(int, w.shape)
    K, N = KH * KW * Cin, Cout
    tk, Kp = _pick_k_tile(K)
    tn = min(256, _round_up(N, 128))
    Np = _round_up(N, tn)
    wm = w.reshape(K, N).astype(jnp.bfloat16)
    if (Kp, Np) != (K, N):
        wm = jnp.pad(wm, ((0, Kp - K), (0, Np - N)))
    bp = jnp.pad(b.astype(jnp.float32), (0, Np - N)).reshape(1, Np)
    arrays = {"wp": wm, "bp": bp}
    meta = {"KH": KH, "KW": KW, "Cin": Cin, "Cout": Cout,
            "K": K, "N": N, "tk": tk, "tn": tn, "Kp": Kp, "Np": Np}
    return arrays, meta


def _fuse_deconv_s2_phases(w, b):
    """Pack the 4 sub-pixel phases of ConvTranspose2d(k=5, s=2, p=2) into ONE
    3x3 conv with 4*Cout output channels, applied to x padded by 1.
      even rows: oh=2i uses taps kh=4,2,0 on x[i-1],x[i],x[i+1]
      odd  rows: oh=2i+1 uses taps kh=3,1 on x[i],x[i+1]
    (same along W); phase order (0,0),(0,1),(1,0),(1,1)."""
    KH, KW, Cin, Cout = w.shape
    assert (KH, KW) == (5, 5)

    def h_sel(ph):
        if ph == 0:
            return jnp.stack([w[4], w[2], w[0]], axis=0)            # (3,5,Cin,Cout)
        return jnp.stack([jnp.zeros_like(w[0]), w[3], w[1]], axis=0)

    def w_sel(wh, pw):
        if pw == 0:
            return jnp.stack([wh[:, 4], wh[:, 2], wh[:, 0]], axis=1)  # (3,3,Cin,Cout)
        return jnp.stack([jnp.zeros_like(wh[:, 0]), wh[:, 3], wh[:, 1]], axis=1)

    phases = [w_sel(h_sel(ph), pw) for ph in (0, 1) for pw in (0, 1)]
    wf = jnp.concatenate(phases, axis=-1)                            # (3,3,Cin,4*Cout)
    bf = jnp.concatenate([b, b, b, b], axis=0)                       # (4*Cout,)
    return wf, bf


def prepare_dblock_params(params, stride):
    """Pack all DBlock weights once.  Returns (arrays pytree, static meta)."""
    arrs, metas = {"res": []}, {"res": []}
    for rp in params["res"]:
        a1, m1 = _prep_conv(rp["conv1"]["w"], rp["conv1"]["b"])
        a2, m2 = _prep_conv(rp["conv2"]["w"], rp["conv2"]["b"])
        arrs["res"].append({"conv1": a1, "conv2": a2})
        metas["res"].append({"conv1": m1, "conv2": m2})
    dw, db = params["deconv"]["w"], params["deconv"]["b"]
    if stride == 1:
        # ConvTranspose2d stride=1, k=5, pad=2  ==  conv with flipped kernel, pad=2
        ad, md = _prep_conv(jnp.flip(dw, axis=(0, 1)), db)
    elif stride == 2:
        wf, bf = _fuse_deconv_s2_phases(dw, db)
        ad, md = _prep_conv(wf, bf)
    else:
        raise NotImplementedError("DBlock deconv implemented for stride in {1, 2}")
    arrs["deconv"], metas["deconv"] = ad, md
    return arrs, metas


# --------------------------------------------------------------------------
# conv wrappers (bf16 NHWC activations, im2col glue -> Pallas GEMM)
# --------------------------------------------------------------------------
def conv2d_prepared(x, arr, meta, padding, act="none", residual=None):
    """x: (N,H,W,Cin) bf16; stride-1 conv via im2col + Pallas GEMM."""
    N, H, W, Cin = x.shape
    KH, KW, Cout = meta["KH"], meta["KW"], meta["Cout"]
    OH = H + 2 * padding - KH + 1
    OW = W + 2 * padding - KW + 1
    xp = x
    if padding:
        xp = jnp.pad(x, ((0, 0), (padding, padding), (padding, padding), (0, 0)))
    cols = [xp[:, kh:kh + OH, kw:kw + OW, :]
            for kh in range(KH) for kw in range(KW)]
    pat = jnp.stack(cols, axis=3).reshape(N * OH * OW, KH * KW * Cin)
    out = matmul_prepared(pat, arr["wp"], arr["bp"], meta, act=act, residual=residual)
    return out.reshape(N, OH, OW, Cout)


def deconv5x5_s2_fused_fwd(x, arr, meta, output_padding):
    """ConvTranspose2d(k=5, s=2, p=2, output_padding) as ONE fused-phase GEMM
    (3x3 window, 4*Cout channels) followed by a 2x2 sub-pixel interleave."""
    N, H, W, _ = x.shape
    Cout = meta["Cout"] // 4
    y = conv2d_prepared(x, arr, meta, padding=1, act="relu")      # (N,H,W,4*Cout)
    y = y.reshape(N, H, W, 2, 2, Cout)
    full = jnp.transpose(y, (0, 1, 3, 2, 4, 5)).reshape(N, 2 * H, 2 * W, Cout)
    OH = 2 * H - 1 + output_padding
    OW = 2 * W - 1 + output_padding
    return full[:, :OH, :OW, :]


# --------------------------------------------------------------------------
# DBlock forward (matches the PyTorch module semantics)
# --------------------------------------------------------------------------
def resblock_fwd(arr, meta, x):
    N, H, W, C = x.shape
    h = conv2d_prepared(x, arr["conv1"], meta["conv1"], padding=2, act="relu")
    # conv2 (no activation) with the skip-add fused into the GEMM epilogue.
    return conv2d_prepared(h, arr["conv2"], meta["conv2"], padding=2, act="none",
                           residual=x.reshape(N * H * W, C))


def dblock_fwd(arrs, x_nchw, *, meta, stride, output_padding):
    x = jnp.transpose(x_nchw, (0, 2, 3, 1)).astype(jnp.bfloat16)   # NCHW -> NHWC bf16, once
    for ra, rm in zip(arrs["res"], meta["res"]):
        x = resblock_fwd(ra, rm, x)
    if stride == 1:
        y = conv2d_prepared(x, arrs["deconv"], meta["deconv"], padding=2, act="relu")
    elif stride == 2:
        y = deconv5x5_s2_fused_fwd(x, arrs["deconv"], meta["deconv"], output_padding)
    else:
        raise NotImplementedError("DBlock deconv implemented for stride in {1, 2}")
    return jnp.transpose(y, (0, 3, 1, 2)).astype(jnp.float32)       # back to NCHW f32


# --------------------------------------------------------------------------
# deterministic parameter construction (shapes match the PyTorch __init__)
# --------------------------------------------------------------------------
def init_dblock_params(key, in_channels, out_channels):
    keys = iter(jax.random.split(key, 8))

    def conv_p(k, cin, cout, ksize, relu):
        fan_in, fan_out = cin * ksize * ksize, cout * ksize * ksize
        std = math.sqrt(2.0 / fan_in) if relu else math.sqrt(2.0 / (fan_in + fan_out))
        # weights stored (KH, KW, Cin, Cout); for the deconv this is the
        # torch (Cin, Cout, KH, KW) tensor transposed to (2, 3, 0, 1).
        w = std * jax.random.normal(k, (ksize, ksize, cin, cout), jnp.float32)
        return {"w": w, "b": jnp.zeros((cout,), jnp.float32)}

    res = [{"conv1": conv_p(next(keys), in_channels, in_channels, 5, True),
            "conv2": conv_p(next(keys), in_channels, in_channels, 5, False)}
           for _ in range(3)]
    deconv = conv_p(next(keys), in_channels, out_channels, 5, True)
    return {"res": res, "deconv": deconv}


# --------------------------------------------------------------------------
# pure-JAX reference (f32, HIGHEST precision) for a correctness cross-check
# --------------------------------------------------------------------------
def _ref_conv(x, w, b, stride, padding):
    w_oihw = jnp.transpose(w, (3, 2, 0, 1))
    y = jax.lax.conv_general_dilated(
        x, w_oihw, (stride, stride), [(padding, padding)] * 2,
        dimension_numbers=("NCHW", "OIHW", "NCHW"),
        precision=jax.lax.Precision.HIGHEST)
    return y + b.reshape(1, -1, 1, 1)


def _ref_deconv(x, w, b, stride, padding, output_padding):
    K = w.shape[0]
    w_oihw = jnp.flip(jnp.transpose(w, (3, 2, 0, 1)), (2, 3))
    lo = K - 1 - padding
    hi = K - 1 - padding + output_padding
    y = jax.lax.conv_general_dilated(
        x, w_oihw, (1, 1), [(lo, hi), (lo, hi)],
        lhs_dilation=(stride, stride),
        dimension_numbers=("NCHW", "OIHW", "NCHW"),
        precision=jax.lax.Precision.HIGHEST)
    return y + b.reshape(1, -1, 1, 1)


def dblock_ref(params, x, stride, output_padding):
    h = x
    for rp in params["res"]:
        t = jax.nn.relu(_ref_conv(h, rp["conv1"]["w"], rp["conv1"]["b"], 1, 2))
        t = _ref_conv(t, rp["conv2"]["w"], rp["conv2"]["b"], 1, 2)
        h = t + h
    y = _ref_deconv(h, params["deconv"]["w"], params["deconv"]["b"],
                    stride, 2, output_padding)
    return jax.nn.relu(y)


if __name__ == "__main__":
    in_ch, out_ch, stride, out_pad = 64, 32, 2, 1     # DBlock(64, 32, 2, 1)
    key = jax.random.PRNGKey(0)
    pkey, xkey = jax.random.split(key)
    params = init_dblock_params(pkey, in_ch, out_ch)
    arrs, meta = prepare_dblock_params(params, stride)   # one-time weight packing
    x = jax.random.normal(xkey, (2, in_ch, 8, 8), jnp.float32)

    fwd = jax.jit(partial(dblock_fwd, meta=meta, stride=stride,
                          output_padding=out_pad))
    y = jax.block_until_ready(fwd(arrs, x))

    OH = (x.shape[2] - 1) * stride - 2 * 2 + 5 + out_pad
    assert y.shape == (x.shape[0], out_ch, OH, OH), y.shape

    ref = dblock_ref(params, x, stride, out_pad)
    err = float(jnp.max(jnp.abs(y - ref)))
    scale = float(jnp.max(jnp.abs(ref))) + 1e-6
    assert err / scale < 5e-2, (err, scale)   # bf16-operand / f32-accum tolerance
    print("KERNEL_OK")
</pallas_src>

<mosaic_0001>
module attributes {stable_mosaic.version = 11 : i64} {
  func.func @_mm_kernel(%arg0: i32, %arg1: i32, %arg2: i32, %arg3: memref<64x1664xbf16, #tpu.memory_space<vmem>>, %arg4: memref<1664x128xbf16, #tpu.memory_space<vmem>>, %arg5: memref<1x128xf32, #tpu.memory_space<vmem>>, %arg6: memref<64x128xbf16, #tpu.memory_space<vmem>>, %arg7: memref<64x128xf32, #tpu.memory_space<vmem>>) attributes {dimension_semantics = [#tpu.dimension_semantics<parallel>, #tpu.dimension_semantics<parallel>, #tpu.dimension_semantics<arbitrary>], iteration_bounds = array<i64: 2, 1, 1>, scalar_prefetch = 0 : i64, scratch_operands = 1 : i64, tpu.core_type = #tpu.core_type<tc>, window_params = [{transform_indices = @transform_0, window_bounds = array<i64: 64, 1664>}, {transform_indices = @transform_1, window_bounds = array<i64: 1664, 128>}, {transform_indices = @transform_2, window_bounds = array<i64: 1, 128>}, {transform_indices = @transform_3, window_bounds = array<i64: 64, 128>}]} {
    %c0_i32 = arith.constant 0 : i32
    %0 = arith.cmpi eq, %arg2, %c0_i32 : i32
    %1 = arith.extui %0 : i1 to i32
    %c0_i32_0 = arith.constant 0 : i32
    %2 = arith.cmpi ne, %1, %c0_i32_0 : i32
    scf.if %2 {
      %cst_10 = arith.constant 0.000000e+00 : f32
      %12 = vector.broadcast %cst_10 : f32 to vector<64x128xf32>
      %c0_11 = arith.constant 0 : index
      %c0_12 = arith.constant 0 : index
      %13 = vector.load %arg5[%c0_11, %c0_12] : memref<1x128xf32, #tpu.memory_space<vmem>>, vector<1x128xf32>
      %14 = vector.broadcast %13 : vector<1x128xf32> to vector<64x128xf32>
      %15 = arith.addf %12, %14 : vector<64x128xf32>
      %c0_13 = arith.constant 0 : index
      %c0_14 = arith.constant 0 : index
      %16 = vector.load %arg7[%c0_13, %c0_14] : memref<64x128xf32, #tpu.memory_space<vmem>>, vector<64x128xf32>
      tpu.vector_store %arg7[%c0_13, %c0_14], %15 {strides = array<i32>} : memref<64x128xf32, #tpu.memory_space<vmem>>, vector<64x128xf32>,
    } else {
    }
    %c0 = arith.constant 0 : index
    %c0_1 = arith.constant 0 : index
    %3 = vector.load %arg7[%c0, %c0_1] : memref<64x128xf32, #tpu.memory_space<vmem>>, vector<64x128xf32>
    %c0_2 = arith.constant 0 : index
    %c0_3 = arith.constant 0 : index
    %4 = vector.load %arg3[%c0_2, %c0_3] : memref<64x1664xbf16, #tpu.memory_space<vmem>>, vector<64x1664xbf16>
    %c0_4 = arith.constant 0 : index
    %c0_5 = arith.constant 0 : index
    %5 = vector.load %arg4[%c0_4, %c0_5] : memref<1664x128xbf16, #tpu.memory_space<vmem>>, vector<1664x128xbf16>
    %cst = arith.constant dense<0.000000e+00> : vector<64x128xf32>
    %6 = tpu.matmul %4, %5, %cst {dimension_numbers = #tpu.dot_dimension_numbers<[1], [0], [0], [1], [0, 0, 1, 1], [], []>} : vector<64x1664xbf16>, vector<1664x128xbf16>, vector<64x128xf32> -> vector<64x128xf32>
    %7 = arith.addf %3, %6 : vector<64x128xf32>
    %c0_6 = arith.constant 0 : index
    %c0_7 = arith.constant 0 : index
    %8 = vector.load %arg7[%c0_6, %c0_7] : memref<64x128xf32, #tpu.memory_space<vmem>>, vector<64x128xf32>
    tpu.vector_store %arg7[%c0_6, %c0_7], %7 {strides = array<i32>} : memref<64x128xf32, #tpu.memory_space<vmem>>, vector<64x128xf32>,
    %c0_i32_8 = arith.constant 0 : i32
    %9 = arith.cmpi eq, %arg2, %c0_i32_8 : i32
    %10 = arith.extui %9 : i1 to i32
    %c0_i32_9 = arith.constant 0 : i32
    %11 = arith.cmpi ne, %10, %c0_i32_9 : i32
    scf.if %11 {
      %c0_10 = arith.constant 0 : index
      %c0_11 = arith.constant 0 : index
      %12 = vector.load %arg7[%c0_10, %c0_11] : memref<64x128xf32, #tpu.memory_space<vmem>>, vector<64x128xf32>
      %cst_12 = arith.constant 0.000000e+00 : f32
      %13 = vector.broadcast %cst_12 : f32 to vector<64x128xf32>
      %14 = arith.maximumf %12, %13 : vector<64x128xf32>
      %15 = arith.truncf %14 : vector<64x128xf32> to vector<64x128xbf16>
      %c0_13 = arith.constant 0 : index
      %c0_14 = arith.constant 0 : index
      %16 = vector.load %arg6[%c0_13, %c0_14] : memref<64x128xbf16, #tpu.memory_space<vmem>>, vector<64x128xbf16>
      tpu.vector_store %arg6[%c0_13, %c0_14], %15 {strides = array<i32>} : memref<64x128xbf16, #tpu.memory_space<vmem>>, vector<64x128xbf16>,
    } else {
    }
    return
  }
  func.func @transform_0(%arg0: i32, %arg1: i32, %arg2: i32) -> (i32, i32) {
    %c0_i32 = arith.constant 0 : i32
    return %arg0, %arg2 : i32, i32
  }
  func.func @transform_1(%arg0: i32, %arg1: i32, %arg2: i32) -> (i32, i32) {
    %c0_i32 = arith.constant 0 : i32
    return %arg2, %arg1 : i32, i32
  }
  func.func @transform_2(%arg0: i32, %arg1: i32, %arg2: i32) -> (i32, i32) {
    %c0_i32 = arith.constant 0 : i32
    %c0_i32_0 = arith.constant 0 : i32
    return %c0_i32, %arg1 : i32, i32
  }
  func.func @transform_3(%arg0: i32, %arg1: i32, %arg2: i32) -> (i32, i32) {
    %c0_i32 = arith.constant 0 : i32
    return %arg0, %arg1 : i32, i32
  }
}

module attributes {stable_mosaic.version = 11 : i64} {
  func.func @_mm_kernel(%arg0: i32, %arg1: i32, %arg2: i32, %arg3: memref<64x1664xbf16, #tpu.memory_space<vmem>>, %arg4: memref<1664x128xbf16, #tpu.memory_space<vmem>>, %arg5: memref<1x128xf32, #tpu.memory_space<vmem>>, %arg6: memref<64x128xbf16, #tpu.memory_space<vmem>>, %arg7: memref<64x128xbf16, #tpu.memory_space<vmem>>, %arg8: memref<64x128xf32, #tpu.memory_space<vmem>>) attributes {dimension_semantics = [#tpu.dimension_semantics<parallel>, #tpu.dimension_semantics<parallel>, #tpu.dimension_semantics<arbitrary>], iteration_bounds = array<i64: 2, 1, 1>, scalar_prefetch = 0 : i64, scratch_operands = 1 : i64, tpu.core_type = #tpu.core_type<tc>, window_params = [{transform_indices = @transform_0, window_bounds = array<i64: 64, 1664>}, {transform_indices = @transform_1, window_bounds = array<i64: 1664, 128>}, {transform_indices = @transform_2, window_bounds = array<i64: 1, 128>}, {transform_indices = @transform_3, window_bounds = array<i64: 64, 128>}, {transform_indices = @transform_4, window_bounds = array<i64: 64, 128>}]} {
    %c0_i32 = arith.constant 0 : i32
    %0 = arith.cmpi eq, %arg2, %c0_i32 : i32
    %1 = arith.extui %0 : i1 to i32
    %c0_i32_0 = arith.constant 0 : i32
    %2 = arith.cmpi ne, %1, %c0_i32_0 : i32
    scf.if %2 {
      %cst_10 = arith.constant 0.000000e+00 : f32
      %12 = vector.broadcast %cst_10 : f32 to vector<64x128xf32>
      %c0_11 = arith.constant 0 : index
      %c0_12 = arith.constant 0 : index
      %13 = vector.load %arg5[%c0_11, %c0_12] : memref<1x128xf32, #tpu.memory_space<vmem>>, vector<1x128xf32>
      %14 = vector.broadcast %13 : vector<1x128xf32> to vector<64x128xf32>
      %15 = arith.addf %12, %14 : vector<64x128xf32>
      %c0_13 = arith.constant 0 : index
      %c0_14 = arith.constant 0 : index
      %16 = vector.load %arg8[%c0_13, %c0_14] : memref<64x128xf32, #tpu.memory_space<vmem>>, vector<64x128xf32>
      tpu.vector_store %arg8[%c0_13, %c0_14], %15 {strides = array<i32>} : memref<64x128xf32, #tpu.memory_space<vmem>>, vector<64x128xf32>,
    } else {
    }
    %c0 = arith.constant 0 : index
    %c0_1 = arith.constant 0 : index
    %3 = vector.load %arg8[%c0, %c0_1] : memref<64x128xf32, #tpu.memory_space<vmem>>, vector<64x128xf32>
    %c0_2 = arith.constant 0 : index
    %c0_3 = arith.constant 0 : index
    %4 = vector.load %arg3[%c0_2, %c0_3] : memref<64x1664xbf16, #tpu.memory_space<vmem>>, vector<64x1664xbf16>
    %c0_4 = arith.constant 0 : index
    %c0_5 = arith.constant 0 : index
    %5 = vector.load %arg4[%c0_4, %c0_5] : memref<1664x128xbf16, #tpu.memory_space<vmem>>, vector<1664x128xbf16>
    %cst = arith.constant dense<0.000000e+00> : vector<64x128xf32>
    %6 = tpu.matmul %4, %5, %cst {dimension_numbers = #tpu.dot_dimension_numbers<[1], [0], [0], [1], [0, 0, 1, 1], [], []>} : vector<64x1664xbf16>, vector<1664x128xbf16>, vector<64x128xf32> -> vector<64x128xf32>
    %7 = arith.addf %3, %6 : vector<64x128xf32>
    %c0_6 = arith.constant 0 : index
    %c0_7 = arith.constant 0 : index
    %8 = vector.load %arg8[%c0_6, %c0_7] : memref<64x128xf32, #tpu.memory_space<vmem>>, vector<64x128xf32>
    tpu.vector_store %arg8[%c0_6, %c0_7], %7 {strides = array<i32>} : memref<64x128xf32, #tpu.memory_space<vmem>>, vector<64x128xf32>,
    %c0_i32_8 = arith.constant 0 : i32
    %9 = arith.cmpi eq, %arg2, %c0_i32_8 : i32
    %10 = arith.extui %9 : i1 to i32
    %c0_i32_9 = arith.constant 0 : i32
    %11 = arith.cmpi ne, %10, %c0_i32_9 : i32
    scf.if %11 {
      %c0_10 = arith.constant 0 : index
      %c0_11 = arith.constant 0 : index
      %12 = vector.load %arg8[%c0_10, %c0_11] : memref<64x128xf32, #tpu.memory_space<vmem>>, vector<64x128xf32>
      %c0_12 = arith.constant 0 : index
      %c0_13 = arith.constant 0 : index
      %13 = vector.load %arg6[%c0_12, %c0_13] : memref<64x128xbf16, #tpu.memory_space<vmem>>, vector<64x128xbf16>
      %14 = arith.extf %13 : vector<64x128xbf16> to vector<64x128xf32>
      %15 = arith.addf %12, %14 : vector<64x128xf32>
      %16 = arith.truncf %15 : vector<64x128xf32> to vector<64x128xbf16>
      %c0_14 = arith.constant 0 : index
      %c0_15 = arith.constant 0 : index
      %17 = vector.load %arg7[%c0_14, %c0_15] : memref<64x128xbf16, #tpu.memory_space<vmem>>, vector<64x128xbf16>
      tpu.vector_store %arg7[%c0_14, %c0_15], %16 {strides = array<i32>} : memref<64x128xbf16, #tpu.memory_space<vmem>>, vector<64x128xbf16>,
    } else {
    }
    return
  }
  func.func @transform_0(%arg0: i32, %arg1: i32, %arg2: i32) -> (i32, i32) {
    %c0_i32 = arith.constant 0 : i32
    return %arg0, %arg2 : i32, i32
  }
  func.func @transform_1(%arg0: i32, %arg1: i32, %arg2: i32) -> (i32, i32) {
    %c0_i32 = arith.constant 0 : i32
    return %arg2, %arg1 : i32, i32
  }
  func.func @transform_2(%arg0: i32, %arg1: i32, %arg2: i32) -> (i32, i32) {
    %c0_i32 = arith.constant 0 : i32
    %c0_i32_0 = arith.constant 0 : i32
    return %c0_i32, %arg1 : i32, i32
  }
  func.func @transform_3(%arg0: i32, %arg1: i32, %arg2: i32) -> (i32, i32) {
    %c0_i32 = arith.constant 0 : i32
    return %arg0, %arg1 : i32, i32
  }
  func.func @transform_4(%arg0: i32, %arg1: i32, %arg2: i32) -> (i32, i32) {
    %c0_i32 = arith.constant 0 : i32
    return %arg0, %arg1 : i32, i32
  }
}

module attributes {stable_mosaic.version = 11 : i64} {
  func.func @_mm_kernel(%arg0: i32, %arg1: i32, %arg2: i32, %arg3: memref<64x640xbf16, #tpu.memory_space<vmem>>, %arg4: memref<640x128xbf16, #tpu.memory_space<vmem>>, %arg5: memref<1x128xf32, #tpu.memory_space<vmem>>, %arg6: memref<64x128xbf16, #tpu.memory_space<vmem>>, %arg7: memref<64x128xf32, #tpu.memory_space<vmem>>) attributes {dimension_semantics = [#tpu.dimension_semantics<parallel>, #tpu.dimension_semantics<parallel>, #tpu.dimension_semantics<arbitrary>], iteration_bounds = array<i64: 2, 1, 1>, scalar_prefetch = 0 : i64, scratch_operands = 1 : i64, tpu.core_type = #tpu.core_type<tc>, window_params = [{transform_indices = @transform_0, window_bounds = array<i64: 64, 640>}, {transform_indices = @transform_1, window_bounds = array<i64: 640, 128>}, {transform_indices = @transform_2, window_bounds = array<i64: 1, 128>}, {transform_indices = @transform_3, window_bounds = array<i64: 64, 128>}]} {
    %c0_i32 = arith.constant 0 : i32
    %0 = arith.cmpi eq, %arg2, %c0_i32 : i32
    %1 = arith.extui %0 : i1 to i32
    %c0_i32_0 = arith.constant 0 : i32
    %2 = arith.cmpi ne, %1, %c0_i32_0 : i32
    scf.if %2 {
      %cst_10 = arith.constant 0.000000e+00 : f32
      %12 = vector.broadcast %cst_10 : f32 to vector<64x128xf32>
      %c0_11 = arith.constant 0 : index
      %c0_12 = arith.constant 0 : index
      %13 = vector.load %arg5[%c0_11, %c0_12] : memref<1x128xf32, #tpu.memory_space<vmem>>, vector<1x128xf32>
      %14 = vector.broadcast %13 : vector<1x128xf32> to vector<64x128xf32>
      %15 = arith.addf %12, %14 : vector<64x128xf32>
      %c0_13 = arith.constant 0 : index
      %c0_14 = arith.constant 0 : index
      %16 = vector.load %arg7[%c0_13, %c0_14] : memref<64x128xf32, #tpu.memory_space<vmem>>, vector<64x128xf32>
      tpu.vector_store %arg7[%c0_13, %c0_14], %15 {strides = array<i32>} : memref<64x128xf32, #tpu.memory_space<vmem>>, vector<64x128xf32>,
    } else {
    }
    %c0 = arith.constant 0 : index
    %c0_1 = arith.constant 0 : index
    %3 = vector.load %arg7[%c0, %c0_1] : memref<64x128xf32, #tpu.memory_space<vmem>>, vector<64x128xf32>
    %c0_2 = arith.constant 0 : index
    %c0_3 = arith.constant 0 : index
    %4 = vector.load %arg3[%c0_2, %c0_3] : memref<64x640xbf16, #tpu.memory_space<vmem>>, vector<64x640xbf16>
    %c0_4 = arith.constant 0 : index
    %c0_5 = arith.constant 0 : index
    %5 = vector.load %arg4[%c0_4, %c0_5] : memref<640x128xbf16, #tpu.memory_space<vmem>>, vector<640x128xbf16>
    %cst = arith.constant dense<0.000000e+00> : vector<64x128xf32>
    %6 = tpu.matmul %4, %5, %cst {dimension_numbers = #tpu.dot_dimension_numbers<[1], [0], [0], [1], [0, 0, 1, 1], [], []>} : vector<64x640xbf16>, vector<640x128xbf16>, vector<64x128xf32> -> vector<64x128xf32>
    %7 = arith.addf %3, %6 : vector<64x128xf32>
    %c0_6 = arith.constant 0 : index
    %c0_7 = arith.constant 0 : index
    %8 = vector.load %arg7[%c0_6, %c0_7] : memref<64x128xf32, #tpu.memory_space<vmem>>, vector<64x128xf32>
    tpu.vector_store %arg7[%c0_6, %c0_7], %7 {strides = array<i32>} : memref<64x128xf32, #tpu.memory_space<vmem>>, vector<64x128xf32>,
    %c0_i32_8 = arith.constant 0 : i32
    %9 = arith.cmpi eq, %arg2, %c0_i32_8 : i32
    %10 = arith.extui %9 : i1 to i32
    %c0_i32_9 = arith.constant 0 : i32
    %11 = arith.cmpi ne, %10, %c0_i32_9 : i32
    scf.if %11 {
      %c0_10 = arith.constant 0 : index
      %c0_11 = arith.constant 0 : index
      %12 = vector.load %arg7[%c0_10, %c0_11] : memref<64x128xf32, #tpu.memory_space<vmem>>, vector<64x128xf32>
      %cst_12 = arith.constant 0.000000e+00 : f32
      %13 = vector.broadcast %cst_12 : f32 to vector<64x128xf32>
      %14 = arith.maximumf %12, %13 : vector<64x128xf32>
      %15 = arith.truncf %14 : vector<64x128xf32> to vector<64x128xbf16>
      %c0_13 = arith.constant 0 : index
      %c0_14 = arith.constant 0 : index
      %16 = vector.load %arg6[%c0_13, %c0_14] : memref<64x128xbf16, #tpu.memory_space<vmem>>, vector<64x128xbf16>
      tpu.vector_store %arg6[%c0_13, %c0_14], %15 {strides = array<i32>} : memref<64x128xbf16, #tpu.memory_space<vmem>>, vector<64x128xbf16>,
    } else {
    }
    return
  }
  func.func @transform_0(%arg0: i32, %arg1: i32, %arg2: i32) -> (i32, i32) {
    %c0_i32 = arith.constant 0 : i32
    return %arg0, %arg2 : i32, i32
  }
  func.func @transform_1(%arg0: i32, %arg1: i32, %arg2: i32) -> (i32, i32) {
    %c0_i32 = arith.constant 0 : i32
    return %arg2, %arg1 : i32, i32
  }
  func.func @transform_2(%arg0: i32, %arg1: i32, %arg2: i32) -> (i32, i32) {
    %c0_i32 = arith.constant 0 : i32
    %c0_i32_0 = arith.constant 0 : i32
    return %c0_i32, %arg1 : i32, i32
  }
  func.func @transform_3(%arg0: i32, %arg1: i32, %arg2: i32) -> (i32, i32) {
    %c0_i32 = arith.constant 0 : i32
    return %arg0, %arg1 : i32, i32
  }
}

</mosaic_0001>

<bundles_post_ra>
// kernel: dblock_fwd.8
= control target key start
LH: loop header
LB: loop body
LE: loop exit
PB: predicated region body
PF: predicated region fallthrough
CT: control target
= control target key end

     0   :  { %s3005_s15 = smov 0   ;;  %s3007_s16 = smov 0   ;;  %s3548_s0 = inlined_call_operand.vmem [shape: bf16[128,1664], index: 0, kind: input, shape index: {}]   ;;  %s3549_s1 = inlined_call_operand.vmem [shape: bf16[1664,128], index: 1, kind: input, shape index: {}]   ;;  %s3550_s2 = inlined_call_operand.vmem [shape: f32[1,128], index: 2, kind: input, shape index: {}]   ;;  %s3551_s3 = inlined_call_operand.vmem [shape: bf16[128,128], index: 3, kind: input, shape index: {}]   ;;  %s3552_s4 = inlined_call_operand.vmem [shape: bf16[128,128], index: 4, kind: output, shape index: {}]  }
   0x1   :  { %s3009_s17 = smov 0  }
   0x2 LB: > { %s33_s18 = sadd.s32 1, %s2974_s16  ;;  %p2083_p0 = scmp.ge.s32.totalorder %s2978_s17, 1  ;;  %s2978_s17 = sphi %s3009_s17, %s14_s17   ;;  %s2974_s16 = sphi %s3007_s16, %s3554_s16   ;;  %s2970_s15 = sphi %s3005_s15, %s3553_s15  }
   0x3   : > { %p35_p1 = scmp.ge.s32.totalorder %s33_s18, 2  ;;  %p232_p2 = scmp.lt.s32.totalorder %s2978_s17, 3 }
   0x5   : > { %s3556_s18 = smov (%p35_p1, %s33_s18), 0  ;;  %p233_p3 = pnand %p2083_p0, %p232_p2 }
   0x6   : > { %s2084_s9 = sshll.u32 (!%p233_p3), %s2970_s15, 3 }
   0x7   : > { %236 = sbr.rel (%p233_p3) target bundleno = 401 (0x191), region = 36  ;;  %p287_p4 = scmp.lt.s32.totalorder (!%p233_p3), %s2084_s9, 15 }
   0xc   : > { %v2775_v0 = vld [vmem:[%s3549_s1 + $0x38] sm:$0xff]  ;;  %v2774_v2 = vld [vmem:[%s3549_s1 + $0x30] sm:$0xff]  ;;  %v2773_v6 = vld [vmem:[%s3549_s1 + $0x28] sm:$0xff]  ;;  %s3558_s9 = smov (!%p287_p4, %s2084_s9), 15 }
   0xd   : > { %v2791_v1 = vld [vmem:[%s3549_s1 + $0xb8] sm:$0xff]  ;;  %2914 = vmatpush.bf16.msra.mxu1 %v2775_v0  ;;  %1504 = vmatpush.bf16.msra.mxu0 %v2775_v0  ;;  %v2790_v3 = vld [vmem:[%s3549_s1 + $0xb0] sm:$0xff]  ;;  %v2789_v7 = vld [vmem:[%s3549_s1 + $0xa8] sm:$0xff]  ;;  %s2930_s29 = smul.u32 52, %s3558_s9 }
   0xe   : > { %1562 = vmatpush.bf16.msra.mxu2 %v2791_v1  ;;  %v2799_v4 = vld [vmem:[%s3549_s1 + $0xf8] sm:$0xff]  ;;  %v2798_v5 = vld [vmem:[%s3549_s1 + $0xf0] sm:$0xff]  ;;  %v2797_v8 = vld [vmem:[%s3549_s1 + $0xe8] sm:$0xff] }
   0xf   : > { %1591 = vmatpush.bf16.msra.mxu3 %v2799_v4  ;;  %v2772_v9 = vld [vmem:[%s3549_s1 + $0x20] sm:$0xff]  ;;  %v2771_v12 = vld [vmem:[%s3549_s1 + $0x18] sm:$0xff]  ;;  %v2770_v15 = vld [vmem:[%s3549_s1 + $0x10] sm:$0xff]  ;;  %s3089_s13 = scalar_lea.vmem %s3548_s0, %s2930_s29 }
  0x10   : > { %v2788_v10 = vld [vmem:[%s3549_s1 + $0xa0] sm:$0xff]  ;;  %v2787_v13 = vld [vmem:[%s3549_s1 + $0x98] sm:$0xff]  ;;  %v2786_v16 = vld [vmem:[%s3549_s1 + $0x90] sm:$0xff] }
  0x11   : > { %2915 = vmatpush.bf16.msra.mxu1 %v2774_v2  ;;  %1505 = vmatpush.bf16.msra.mxu0 %v2774_v2  ;;  %v2796_v11 = vld [vmem:[%s3549_s1 + $0xe0] sm:$0xff]  ;;  %v2795_v14 = vld [vmem:[%s3549_s1 + $0xd8] sm:$0xff]  ;;  %v2794_v17 = vld [vmem:[%s3549_s1 + $0xd0] sm:$0xff] }
  0x12   : > { %1563 = vmatpush.bf16.msra.mxu2 %v2790_v3  ;;  %v2769_v18 = vld [vmem:[%s3549_s1 + $0x8] sm:$0xff]  ;;  %v2768_v20 = vld [vmem:[%s3549_s1] sm:$0xff]  ;;  %v2196_v21 = vld [vmem:[%s3089_s13 + $0xd0] sm:$0xf] }
  0x13   : > { %1592 = vmatpush.bf16.msra.mxu3 %v2798_v5  ;;  %v2785_v19 = vld [vmem:[%s3549_s1 + $0x88] sm:$0xff]  ;;  %v2783_v22 = vld [vmem:[%s3549_s1 + $0x78] sm:$0xff]  ;;  %v2748_v24 = vld [vmem:[%s3089_s13 + $0x100] sm:$0xf0] }
  0x14   : > { %v2793_v23 = vld [vmem:[%s3549_s1 + $0xc8] sm:$0xff]  ;;  %v2092_v25 = vld [vmem:[%s3089_s13] sm:$0xf]  ;;  %v2722_v26 = vld [vmem:[%s3089_s13 + $0x30] sm:$0xf0]  ;;  %v2197_v32 = vor.u32 %v2748_v24, %v2196_v21 }
  0x15   : > { %2916 = vmatpush.bf16.msra.mxu1 %v2773_v6  ;;  %1506 = vmatpush.bf16.msra.mxu0 %v2773_v6  ;;  %v2784_v27 = vld [vmem:[%s3549_s1 + $0x80] sm:$0xff]  ;;  %v2100_v28 = vld [vmem:[%s3089_s13 + $0x8] sm:$0xf]  ;;  %v2723_v29 = vld [vmem:[%s3089_s13 + $0x38] sm:$0xf0]  ;;  %v2093_v33 = vor.u32 %v2722_v26, %v2092_v25 }
  0x16   : > { %1564 = vmatpush.bf16.msra.mxu2 %v2789_v7  ;;  %v2807_v30 = vld [vmem:[%s3549_s1 + $0x138] sm:$0xff]  ;;  %v2101_v34 = vor.u32 %v2723_v29, %v2100_v28  ;;  %v2792_v35 = vld [vmem:[%s3549_s1 + $0xc0] sm:$0xff]  ;;  %v2717_v36 = vld [vmem:[%s3089_s13 + $0xc] sm:$0xf] }
  0x17   : > { %1593 = vmatpush.bf16.msra.mxu3 %v2797_v8  ;;  %v2823_v31 = vld [vmem:[%s3549_s1 + $0x1b8] sm:$0xff]  ;;  %v2102_v37 = vld [vmem:[%s3089_s13 + $0x3c] sm:$0xf0]  ;;  %v2782_v38 = vld [vmem:[%s3549_s1 + $0x70] sm:$0xff] }
  0x18   : > { %v2831_v39 = vld [vmem:[%s3549_s1 + $0x1f8] sm:$0xff]  ;;  %v2806_v40 = vld [vmem:[%s3549_s1 + $0x130] sm:$0xff]  ;;  %v2105_v42 = vor.u32 %v2717_v36, %v2102_v37  ;;  %v2781_v43 = vld [vmem:[%s3549_s1 + $0x68] sm:$0xff] }
  0x19   : > { %2917 = vmatpush.bf16.msra.mxu1 %v2772_v9  ;;  %1507 = vmatpush.bf16.msra.mxu0 %v2772_v9  ;;  %v2822_v41 = vld [vmem:[%s3549_s1 + $0x1b0] sm:$0xff]  ;;  %v2805_v45 = vld [vmem:[%s3549_s1 + $0x128] sm:$0xff]  ;;  %v2780_v47 = vld [vmem:[%s3549_s1 + $0x60] sm:$0xff] }
  0x1a   : > { %1565 = vmatpush.bf16.msra.mxu2 %v2788_v10  ;;  %v2830_v44 = vld [vmem:[%s3549_s1 + $0x1f0] sm:$0xff]  ;;  %v2821_v46 = vld [vmem:[%s3549_s1 + $0x1a8] sm:$0xff]  ;;  %v2804_v49 = vld [vmem:[%s3549_s1 + $0x120] sm:$0xff] }
  0x1b   : > { %1594 = vmatpush.bf16.msra.mxu3 %v2796_v11  ;;  %v2829_v48 = vld [vmem:[%s3549_s1 + $0x1e8] sm:$0xff]  ;;  %v2820_v50 = vld [vmem:[%s3549_s1 + $0x1a0] sm:$0xff]  ;;  %v2248_v51 = vld [vmem:[%s3089_s13 + $0x138] sm:$0xf] }
  0x1c   : > { %v2761_v52 = vld [vmem:[%s3089_s13 + $0x168] sm:$0xf0]  ;;  %v2144_v53 = vld [vmem:[%s3089_s13 + $0x68] sm:$0xf]  ;;  %v2735_v54 = vld [vmem:[%s3089_s13 + $0x98] sm:$0xf0] }
  0x1d   : > { %2918 = vmatpush.bf16.msra.mxu1 %v2771_v12  ;;  %1508 = vmatpush.bf16.msra.mxu0 %v2771_v12  ;;  %v2779_v55 = vld [vmem:[%s3549_s1 + $0x58] sm:$0xff]  ;;  %v2152_v56 = vld [vmem:[%s3089_s13 + $0x70] sm:$0xf]  ;;  %v2736_v57 = vld [vmem:[%s3089_s13 + $0xa0] sm:$0xf0]  ;;  %v2249_v59 = vor.u32 %v2761_v52, %v2248_v51  ;;  %v2145_v60 = vor.u32 %v2735_v54, %v2144_v53 }
  0x1e   : > { %1566 = vmatpush.bf16.msra.mxu2 %v2787_v13  ;;  %v2803_v58 = vld [vmem:[%s3549_s1 + $0x118] sm:$0xff]  ;;  %v2153_v61 = vor.u32 %v2736_v57, %v2152_v56  ;;  %v2730_v62 = vld [vmem:[%s3089_s13 + $0x74] sm:$0xf]  ;;  %v2154_v63 = vld [vmem:[%s3089_s13 + $0xa4] sm:$0xf0] }
  0x1f   : > { %1595 = vmatpush.bf16.msra.mxu3 %v2795_v14  ;;  %v2778_v0 = vld [vmem:[%s3549_s1 + $0x50] sm:$0xff]  ;;  %v2157_v2 = vor.u32 %v2730_v62, %v2154_v63  ;;  %v2819_v3 = vld [vmem:[%s3549_s1 + $0x198] sm:$0xff]  ;;  %v2777_v4 = vld [vmem:[%s3549_s1 + $0x48] sm:$0xff] }
  0x20   : > { %v2802_v1 = vld [vmem:[%s3549_s1 + $0x110] sm:$0xff]  ;;  %v2828_v5 = vld [vmem:[%s3549_s1 + $0x1e0] sm:$0xff]  ;;  %v2801_v6 = vld [vmem:[%s3549_s1 + $0x108] sm:$0xff] }
  0x21   : > { %2919 = vmatpush.bf16.msra.mxu1 %v2770_v15  ;;  %1509 = vmatpush.bf16.msra.mxu0 %v2770_v15  ;;  %v2818_v7 = vld [vmem:[%s3549_s1 + $0x190] sm:$0xff]  ;;  %v2827_v8 = vld [vmem:[%s3549_s1 + $0x1d8] sm:$0xff]  ;;  %v2776_v9 = vld [vmem:[%s3549_s1 + $0x40] sm:$0xff] }
  0x22   : > { %1567 = vmatpush.bf16.msra.mxu2 %v2786_v16  ;;  %v2815_v10 = vld [vmem:[%s3549_s1 + $0x178] sm:$0xff]  ;;  %v2800_v11 = vld [vmem:[%s3549_s1 + $0x100] sm:$0xff]  ;;  %v2108_v15 = vld [vmem:[%s3089_s13 + $0x10] sm:$0xf] }
  0x23   : > { %1596 = vmatpush.bf16.msra.mxu3 %v2794_v17  ;;  %v2716_v12 = vld [vmem:[%s3089_s13 + $0x4] sm:$0xf]  ;;  %v2839_v13 = vld [vmem:[%s3549_s1 + $0x238] sm:$0xff]  ;;  %v2206_v24 = vld [vmem:[%s3089_s13 + $0x10c] sm:$0xf0] }
  0x24   : > { %v2094_v14 = vld [vmem:[%s3089_s13 + $0x34] sm:$0xf0]  ;;  %v2724_v16 = vld [vmem:[%s3089_s13 + $0x40] sm:$0xf0]  ;;  %v2838_v25 = vld [vmem:[%s3549_s1 + $0x230] sm:$0xff] }
  0x25   : > { %2920 = vmatpush.bf16.msra.mxu1 %v2769_v18  ;;  %1510 = vmatpush.bf16.msra.mxu0 %v2769_v18  ;;  %v2204_v17 = vld [vmem:[%s3089_s13 + $0xd8] sm:$0xf]  ;;  %v2749_v18 = vld [vmem:[%s3089_s13 + $0x108] sm:$0xf0]  ;;  %v2109_v21 = vor.u32 %v2724_v16, %v2108_v15  ;;  %v2816_v29 = vld [vmem:[%s3549_s1 + $0x180] sm:$0xff] }
  0x26   : > { %1568 = vmatpush.bf16.msra.mxu2 %v2785_v19  ;;  %v2814_v19 = vld [vmem:[%s3549_s1 + $0x170] sm:$0xff]  ;;  %v2813_v26 = vld [vmem:[%s3549_s1 + $0x168] sm:$0xff]  ;;  %v2146_v37 = vld [vmem:[%s3089_s13 + $0x9c] sm:$0xf0] }
  0x27   : > { %1597 = vmatpush.bf16.msra.mxu3 %v2793_v23  ;;  %v2743_v23 = vld [vmem:[%s3089_s13 + $0xdc] sm:$0xf]  ;;  %v2729_v36 = vld [vmem:[%s3089_s13 + $0x6c] sm:$0xf]  ;;  %v2824_v51 = vld [vmem:[%s3549_s1 + $0x1c0] sm:$0xff] }
  0x28   : > { %v2209_v28 = vor.u32 %v2743_v23, %v2206_v24  ;;  %v2835_v52 = vld [vmem:[%s3549_s1 + $0x218] sm:$0xff]  ;;  %v2808_v53 = vld [vmem:[%s3549_s1 + $0x140] sm:$0xff]  ;;  %v2854_v54 = vld [vmem:[%s3549_s1 + $0x2b0] sm:$0xff] }
  0x29   : > { %2921 = vmatpush.bf16.msra.mxu1 %v2768_v20  ;;  %1511 = vmatpush.bf16.msra.mxu0 %v2768_v20  ;;  %v2097_v20 = vor.u32 %v2716_v12, %v2094_v14  ;;  %v2863_v56 = vld [vmem:[%s3549_s1 + $0x2f8] sm:$0xff]  ;;  %v2742_v57 = vld [vmem:[%s3089_s13 + $0xd4] sm:$0xf]  ;;  %v2725_v63 = vld [vmem:[%s3089_s13 + $0x48] sm:$0xf0] }
  0x2a   : > { %1569 = vmatpush.bf16.msra.mxu2 %v2784_v27  ;;  %v2817_v27 = vld [vmem:[%s3549_s1 + $0x188] sm:$0xff]  ;;  %v2116_v62 = vld [vmem:[%s3089_s13 + $0x18] sm:$0xf]  ;;  %v2250_v14 = vld [vmem:[%s3089_s13 + $0x16c] sm:$0xf0] }
  0x2b   : > { %1598 = vmatpush.bf16.msra.mxu3 %v2792_v35  ;;  %v2811_v35 = vld [vmem:[%s3549_s1 + $0x158] sm:$0xff]  ;;  %v2861_v12 = vld [vmem:[%s3549_s1 + $0x2e8] sm:$0xff] }
  0x2c   : > { %1522 = vmatmul.bf16.vlgmr.msra.gmra.mxu1 %v2197_v32  ;;  %1512 = vmatmul.bf16.vlgmr.msra.gmra.mxu0 %v2093_v33  ;;  %v2812_v32 = vld [vmem:[%s3549_s1 + $0x160] sm:$0xff]  ;;  %v2825_v33 = vld [vmem:[%s3549_s1 + $0x1c8] sm:$0xff]  ;;  %v2763_v16 = vld [vmem:[%s3089_s13 + $0x178] sm:$0xf0] }
  0x2d   : > { %1533 = vmatpush.bf16.msrb.mxu1 %v2783_v22  ;;  %1620 = vmatpush.bf16.msrb.mxu0 %v2807_v30  ;;  %v2205_v22 = vor.u32 %v2749_v18, %v2204_v17  ;;  %v2826_v30 = vld [vmem:[%s3549_s1 + $0x1d0] sm:$0xff]  ;;  %v2264_v15 = vld [vmem:[%s3089_s13 + $0x148] sm:$0xf]  ;;  %v2168_v17 = vld [vmem:[%s3089_s13 + $0x80] sm:$0xf] }
  0x2e   : > { %1678 = vmatpush.bf16.msrb.mxu2 %v2823_v31  ;;  %1599 = vmatmul.bf16.vlgmr.msra.gmra.mxu3 %v2105_v42  ;;  %v2837_v31 = vld [vmem:[%s3549_s1 + $0x228] sm:$0xff]  ;;  %v2810_v42 = vld [vmem:[%s3549_s1 + $0x150] sm:$0xff]  ;;  %v2170_v23 = vld [vmem:[%s3089_s13 + $0xb4] sm:$0xf0] }
  0x2f   : > { %1570 = vmatmul.bf16.vlgmr.msra.gmra.mxu2 %v2101_v34  ;;  %1707 = vmatpush.bf16.msrb.mxu3 %v2831_v39  ;;  %v2836_v34 = vld [vmem:[%s3549_s1 + $0x220] sm:$0xff]  ;;  %v2737_v39 = vld [vmem:[%s3089_s13 + $0xa8] sm:$0xf0]  ;;  %v2738_v18 = vld [vmem:[%s3089_s13 + $0xb0] sm:$0xf0] }
  0x31   : > { %1534 = vmatpush.bf16.msrb.mxu1 %v2782_v38  ;;  %1621 = vmatpush.bf16.msrb.mxu0 %v2806_v40  ;;  %v2160_v38 = vld [vmem:[%s3089_s13 + $0x78] sm:$0xf]  ;;  %v2256_v40 = vld [vmem:[%s3089_s13 + $0x140] sm:$0xf] }
  0x32   : > { %1679 = vmatpush.bf16.msrb.mxu2 %v2822_v41  ;;  %v2762_v41 = vld [vmem:[%s3089_s13 + $0x170] sm:$0xf0] }
  0x33   : > { %1708 = vmatpush.bf16.msrb.mxu3 %v2830_v44  ;;  %v2161_v44 = vor.u32 %v2737_v39, %v2160_v38  ;;  %v2745_v39 = vld [vmem:[%s3089_s13 + $0xec] sm:$0xf] }
  0x35   : > { %1535 = vmatpush.bf16.msrb.mxu1 %v2781_v43  ;;  %1622 = vmatpush.bf16.msrb.mxu0 %v2805_v45  ;;  %v2149_v43 = vor.u32 %v2729_v36, %v2146_v37  ;;  %v2257_v45 = vor.u32 %v2762_v41, %v2256_v40  ;;  %v2751_v36 = vld [vmem:[%s3089_s13 + $0x118] sm:$0xf0]  ;;  %v2222_v41 = vld [vmem:[%s3089_s13 + $0x11c] sm:$0xf0] }
  0x36   : > { %1680 = vmatpush.bf16.msrb.mxu2 %v2821_v46  ;;  %v2756_v46 = vld [vmem:[%s3089_s13 + $0x144] sm:$0xf] }
  0x37   : > { %1709 = vmatpush.bf16.msrb.mxu3 %v2829_v48 }
  0x39   : > { %1536 = vmatpush.bf16.msrb.mxu1 %v2780_v47  ;;  %1623 = vmatpush.bf16.msrb.mxu0 %v2804_v49  ;;  %v2258_v47 = vld [vmem:[%s3089_s13 + $0x174] sm:$0xf0]  ;;  %v2809_v49 = vld [vmem:[%s3549_s1 + $0x148] sm:$0xff] }
  0x3a   : > { %1681 = vmatpush.bf16.msrb.mxu2 %v2820_v50  ;;  %v2261_v48 = vor.u32 %v2756_v46, %v2258_v47  ;;  %v2855_v50 = vld [vmem:[%s3549_s1 + $0x2b8] sm:$0xff]  ;;  %v2848_v47 = vld [vmem:[%s3549_s1 + $0x280] sm:$0xff] }
  0x3b   : > { %1710 = vmatpush.bf16.msrb.mxu3 %v2828_v5  ;;  %v2843_v46 = vld [vmem:[%s3549_s1 + $0x258] sm:$0xff] }
  0x3c   : > { %1527 = vmatmul.bf16.gmra.mxu1 %v2249_v59  ;;  %1517 = vmatmul.bf16.gmra.mxu0 %v2145_v60  ;;  %v2198_v59 = vld [vmem:[%s3089_s13 + $0x104] sm:$0xf0]  ;;  %v2212_v60 = vld [vmem:[%s3089_s13 + $0xe0] sm:$0xf] }
  0x3d   : > { %1537 = vmatpush.bf16.msrb.mxu1 %v2779_v55  ;;  %1624 = vmatpush.bf16.msrb.mxu0 %v2803_v58  ;;  %v2834_v55 = vld [vmem:[%s3549_s1 + $0x210] sm:$0xff]  ;;  %v2833_v58 = vld [vmem:[%s3549_s1 + $0x208] sm:$0xff] }
  0x3e   : > { %1682 = vmatpush.bf16.msrb.mxu2 %v2819_v3  ;;  %1604 = vmatmul.bf16.gmra.mxu3 %v2157_v2  ;;  %v2117_v2 = vor.u32 %v2725_v63, %v2116_v62  ;;  %v2719_v3 = vld [vmem:[%s3089_s13 + $0x1c] sm:$0xf]  ;;  %v2857_v62 = vld [vmem:[%s3549_s1 + $0x2c8] sm:$0xff]  ;;  %v2868_v63 = vld [vmem:[%s3549_s1 + $0x320] sm:$0xff] }
  0x3f   : > { %1575 = vmatmul.bf16.gmra.mxu2 %v2153_v61  ;;  %1711 = vmatpush.bf16.msrb.mxu3 %v2827_v8  ;;  %v2750_v61 = vld [vmem:[%s3089_s13 + $0x110] sm:$0xf0]  ;;  %v2832_v8 = vld [vmem:[%s3549_s1 + $0x200] sm:$0xff] }
  0x41   : > { %1538 = vmatpush.bf16.msrb.mxu1 %v2778_v0  ;;  %1625 = vmatpush.bf16.msrb.mxu0 %v2802_v1  ;;  %v2201_v0 = vor.u32 %v2742_v57, %v2198_v59  ;;  %v2213_v1 = vor.u32 %v2750_v61, %v2212_v60  ;;  %v2758_v59 = vld [vmem:[%s3089_s13 + $0x154] sm:$0xf]  ;;  %v2274_v61 = vld [vmem:[%s3089_s13 + $0x184] sm:$0xf0] }
  0x42   : > { %1683 = vmatpush.bf16.msrb.mxu2 %v2818_v7  ;;  %v2853_v7 = vld [vmem:[%s3549_s1 + $0x2a8] sm:$0xff] }
  0x43   : > { %1712 = vmatpush.bf16.msrb.mxu3 %v2826_v30  ;;  %v2850_v30 = vld [vmem:[%s3549_s1 + $0x290] sm:$0xff] }
  0x45   : > { %1539 = vmatpush.bf16.msrb.mxu1 %v2777_v4  ;;  %1626 = vmatpush.bf16.msrb.mxu0 %v2801_v6  ;;  %v2118_v4 = vld [vmem:[%s3089_s13 + $0x4c] sm:$0xf0]  ;;  %v2847_v6 = vld [vmem:[%s3549_s1 + $0x278] sm:$0xff] }
  0x46   : > { %1684 = vmatpush.bf16.msrb.mxu2 %v2817_v27  ;;  %v2121_v5 = vor.u32 %v2719_v3, %v2118_v4  ;;  %v2860_v27 = vld [vmem:[%s3549_s1 + $0x2e0] sm:$0xff]  ;;  %v2867_v3 = vld [vmem:[%s3549_s1 + $0x318] sm:$0xff] }
  0x47   : > { %1713 = vmatpush.bf16.msrb.mxu3 %v2825_v33  ;;  %v2124_v33 = vld [vmem:[%s3089_s13 + $0x20] sm:$0xf] }
  0x48   : > { %v2840_v4 = vld [vmem:[%s3549_s1 + $0x240] sm:$0xff] }
  0x49   : > { %1540 = vmatpush.bf16.msrb.mxu1 %v2776_v9  ;;  %1627 = vmatpush.bf16.msrb.mxu0 %v2800_v11  ;;  %v2862_v9 = vld [vmem:[%s3549_s1 + $0x2f0] sm:$0xff]  ;;  %v2852_v11 = vld [vmem:[%s3549_s1 + $0x2a0] sm:$0xff] }
  0x4a   : > { %1685 = vmatpush.bf16.msrb.mxu2 %v2816_v29  ;;  %v2844_v29 = vld [vmem:[%s3549_s1 + $0x260] sm:$0xff] }
  0x4b   : > { %1714 = vmatpush.bf16.msrb.mxu3 %v2824_v51  ;;  %v2731_v51 = vld [vmem:[%s3089_s13 + $0x7c] sm:$0xf] }
  0x4c   : > { %1541 = vmatmul.bf16.vlgmr.msrb.gmra.mxu1 %v2097_v20  ;;  %1628 = vmatmul.bf16.vlgmr.msrb.gmra.mxu0 %v2109_v21  ;;  %v2265_v20 = vor.u32 %v2763_v16, %v2264_v15  ;;  %v2169_v21 = vor.u32 %v2738_v18, %v2168_v17  ;;  %v2721_v17 = vld [vmem:[%s3089_s13 + $0x2c] sm:$0xf]  ;;  %v2134_v18 = vld [vmem:[%s3089_s13 + $0x5c] sm:$0xf0] }
  0x4d   : > { %1649 = vmatpush.bf16.msra.mxu1 %v2815_v10  ;;  %1736 = vmatpush.bf16.msra.mxu0 %v2839_v13  ;;  %v2846_v10 = vld [vmem:[%s3549_s1 + $0x270] sm:$0xff]  ;;  %v2755_v13 = vld [vmem:[%s3089_s13 + $0x13c] sm:$0xf] }
  0x4e   : > { %1609 = vmatmul.bf16.gmra.mxu3 %v2209_v28  ;;  %1794 = vmatpush.bf16.msra.mxu2 %v2855_v50  ;;  %v2871_v28 = vld [vmem:[%s3549_s1 + $0x338] sm:$0xff]  ;;  %v2842_v50 = vld [vmem:[%s3549_s1 + $0x250] sm:$0xff] }
  0x4f   : > { %1580 = vmatmul.bf16.gmra.mxu2 %v2205_v22  ;;  %1823 = vmatpush.bf16.msra.mxu3 %v2863_v56  ;;  %v2732_v22 = vld [vmem:[%s3089_s13 + $0x84] sm:$0xf] }
  0x50   : > { %v2173_v24 = vor.u32 %v2732_v22, %v2170_v23  ;;  %v2764_v56 = vld [vmem:[%s3089_s13 + $0x180] sm:$0xf0] }
  0x51   : > { %1650 = vmatpush.bf16.msra.mxu1 %v2814_v19  ;;  %1737 = vmatpush.bf16.msra.mxu0 %v2838_v25  ;;  %v2253_v19 = vor.u32 %v2755_v13, %v2250_v14  ;;  %v2845_v25 = vld [vmem:[%s3549_s1 + $0x268] sm:$0xff] }
  0x52   : > { %1795 = vmatpush.bf16.msra.mxu2 %v2854_v54  ;;  %v2739_v54 = vld [vmem:[%s3089_s13 + $0xb8] sm:$0xf0] }
  0x53   : > { %1824 = vmatpush.bf16.msra.mxu3 %v2862_v9  ;;  %v2752_v9 = vld [vmem:[%s3089_s13 + $0x120] sm:$0xf0] }
  0x55   : > { %1651 = vmatpush.bf16.msra.mxu1 %v2813_v26  ;;  %1738 = vmatpush.bf16.msra.mxu0 %v2837_v31  ;;  %v2851_v26 = vld [vmem:[%s3549_s1 + $0x298] sm:$0xff]  ;;  %v2718_v31 = vld [vmem:[%s3089_s13 + $0x14] sm:$0xf] }
  0x56   : > { %1796 = vmatpush.bf16.msra.mxu2 %v2853_v7  ;;  %v2214_v7 = vld [vmem:[%s3089_s13 + $0x114] sm:$0xf0] }
  0x57   : > { %1825 = vmatpush.bf16.msra.mxu3 %v2861_v12 }
  0x59   : > { %1652 = vmatpush.bf16.msra.mxu1 %v2812_v32  ;;  %1739 = vmatpush.bf16.msra.mxu0 %v2836_v34  ;;  %v2110_v32 = vld [vmem:[%s3089_s13 + $0x44] sm:$0xf0]  ;;  %v2726_v34 = vld [vmem:[%s3089_s13 + $0x50] sm:$0xf0] }
  0x5a   : > { %1797 = vmatpush.bf16.msra.mxu2 %v2852_v11  ;;  %v2113_v37 = vor.u32 %v2718_v31, %v2110_v32  ;;  %v2125_v38 = vor.u32 %v2726_v34, %v2124_v33  ;;  %v2727_v11 = vld [vmem:[%s3089_s13 + $0x58] sm:$0xf0]  ;;  %v2740_v31 = vld [vmem:[%s3089_s13 + $0xc0] sm:$0xf0] }
  0x5b   : > { %1826 = vmatpush.bf16.msra.mxu3 %v2860_v27  ;;  %v2266_v27 = vld [vmem:[%s3089_s13 + $0x17c] sm:$0xf0] }
  0x5c   : > { %1546 = vmatmul.bf16.gmra.mxu1 %v2149_v43  ;;  %1633 = vmatmul.bf16.gmra.mxu0 %v2161_v44  ;;  %v2870_v43 = vld [vmem:[%s3549_s1 + $0x330] sm:$0xff]  ;;  %v2849_v44 = vld [vmem:[%s3549_s1 + $0x288] sm:$0xff] }
  0x5d   : > { %1653 = vmatpush.bf16.msra.mxu1 %v2811_v35  ;;  %1740 = vmatpush.bf16.msra.mxu0 %v2835_v52  ;;  %v2220_v35 = vld [vmem:[%s3089_s13 + $0xe8] sm:$0xf]  ;;  %v2162_v52 = vld [vmem:[%s3089_s13 + $0xac] sm:$0xf0] }
  0x5e   : > { %1614 = vmatmul.bf16.gmra.mxu3 %v2261_v48  ;;  %1798 = vmatpush.bf16.msra.mxu2 %v2851_v26  ;;  %v2221_v40 = vor.u32 %v2751_v36, %v2220_v35  ;;  %v2858_v48 = vld [vmem:[%s3549_s1 + $0x2d0] sm:$0xff]  ;;  %v2165_v57 = vor.u32 %v2731_v51, %v2162_v52  ;;  %v2757_v26 = vld [vmem:[%s3089_s13 + $0x14c] sm:$0xf] }
  0x5f   : > { %1585 = vmatmul.bf16.gmra.mxu2 %v2257_v45  ;;  %v2225_v45 = vor.u32 %v2745_v39, %v2222_v41  ;;  %v2269_v32 = vor.u32 %v2757_v26, %v2266_v27  ;;  %v2186_v39 = vld [vmem:[%s3089_s13 + $0xc4] sm:$0xf0]  ;;  %v2753_v51 = vld [vmem:[%s3089_s13 + $0x128] sm:$0xf0] }
  0x61   : > { %1654 = vmatpush.bf16.msra.mxu1 %v2810_v42  ;;  %1741 = vmatpush.bf16.msra.mxu0 %v2834_v55  ;;  %v2859_v42 = vld [vmem:[%s3549_s1 + $0x2d8] sm:$0xff]  ;;  %v2272_v55 = vld [vmem:[%s3089_s13 + $0x150] sm:$0xf] }
  0x62   : > { %1799 = vmatpush.bf16.msra.mxu2 %v2850_v30  ;;  %1827 = vmatpush.bf16.msra.mxu3 %v2859_v42  ;;  %v2273_v60 = vor.u32 %v2764_v56, %v2272_v55  ;;  %v2184_v30 = vld [vmem:[%s3089_s13 + $0x90] sm:$0xf] }
  0x65   : > { %1655 = vmatpush.bf16.msra.mxu1 %v2809_v49  ;;  %1742 = vmatpush.bf16.msra.mxu0 %v2833_v58  ;;  %v2869_v49 = vld [vmem:[%s3549_s1 + $0x328] sm:$0xff] }
  0x66   : > { %1800 = vmatpush.bf16.msra.mxu2 %v2849_v44  ;;  %1828 = vmatpush.bf16.msra.mxu3 %v2858_v48  ;;  %v2140_v48 = vld [vmem:[%s3089_s13 + $0x30] sm:$0xf] }
  0x69   : > { %1656 = vmatpush.bf16.msra.mxu1 %v2808_v53  ;;  %1743 = vmatpush.bf16.msra.mxu0 %v2832_v8  ;;  %v2176_v53 = vld [vmem:[%s3089_s13 + $0x88] sm:$0xf]  ;;  %v2228_v8 = vld [vmem:[%s3089_s13 + $0xf0] sm:$0xf] }
  0x6a   : > { %1801 = vmatpush.bf16.msra.mxu2 %v2848_v47  ;;  %v2177_v58 = vor.u32 %v2739_v54, %v2176_v53  ;;  %1829 = vmatpush.bf16.msra.mxu3 %v2857_v62  ;;  %v2229_v13 = vor.u32 %v2752_v9, %v2228_v8  ;;  %v2126_v47 = vld [vmem:[%s3089_s13 + $0x54] sm:$0xf0]  ;;  %v2733_v8 = vld [vmem:[%s3089_s13 + $0x8c] sm:$0xf]  ;;  %v2178_v9 = vld [vmem:[%s3089_s13 + $0xbc] sm:$0xf0] }
  0x6c   : > { %1551 = vmatmul.bf16.gmra.mxu1 %v2201_v0  ;;  %1638 = vmatmul.bf16.gmra.mxu0 %v2213_v1  ;;  %v2277_v0 = vor.u32 %v2758_v59, %v2274_v61  ;;  %v2841_v1 = vld [vmem:[%s3549_s1 + $0x248] sm:$0xff]  ;;  %v2238_v59 = vld [vmem:[%s3089_s13 + $0x12c] sm:$0xf0] }
  0x6d   : > { %1765 = vmatpush.bf16.msrb.mxu1 %v2847_v6  ;;  %1852 = vmatpush.bf16.msrb.mxu0 %v2871_v28  ;;  %v2744_v6 = vld [vmem:[%s3089_s13 + $0xe4] sm:$0xf] }
  0x6e   : > { %1715 = vmatmul.bf16.vlgmr.msrb.gmra.mxu3 %v2121_v5  ;;  %v2866_v5 = vld [vmem:[%s3549_s1 + $0x310] sm:$0xff]  ;;  %v2217_v12 = vor.u32 %v2744_v6, %v2214_v7 }
  0x6f   : > { %1686 = vmatmul.bf16.vlgmr.msrb.gmra.mxu2 %v2117_v2  ;;  %v2856_v2 = vld [vmem:[%s3549_s1 + $0x2c0] sm:$0xff] }
  0x70   : > { %2922 = vmatpush.bf16.msrb.mxu2 %v2871_v28  ;;  %1830 = vmatpush.bf16.msra.mxu3 %v2856_v2  ;;  %v2280_v28 = vld [vmem:[%s3089_s13 + $0x158] sm:$0xf] }
  0x71   : > { %1766 = vmatpush.bf16.msrb.mxu1 %v2846_v10  ;;  %1853 = vmatpush.bf16.msrb.mxu0 %v2870_v43  ;;  %v2132_v10 = vld [vmem:[%s3089_s13 + $0x28] sm:$0xf] }
  0x72   : > { %v2133_v16 = vor.u32 %v2727_v11, %v2132_v10  ;;  %v2192_v10 = vld [vmem:[%s3089_s13 + $0x98] sm:$0xf]  ;;  %v2741_v11 = vld [vmem:[%s3089_s13 + $0xc8] sm:$0xf0] }
  0x74   : > { %2923 = vmatpush.bf16.msrb.mxu2 %v2870_v43 }
  0x75   : > { %1767 = vmatpush.bf16.msrb.mxu1 %v2845_v25  ;;  %1854 = vmatpush.bf16.msrb.mxu0 %v2869_v49 }
  0x78   : > { %2924 = vmatpush.bf16.msrb.mxu2 %v2869_v49  ;;  %v2728_v49 = vld [vmem:[%s3089_s13 + $0x60] sm:$0xf0] }
  0x79   : > { %1768 = vmatpush.bf16.msrb.mxu1 %v2844_v29  ;;  %1855 = vmatpush.bf16.msrb.mxu0 %v2868_v63  ;;  %v2765_v29 = vld [vmem:[%s3089_s13 + $0x188] sm:$0xf0]  ;;  %v2141_v54 = vor.u32 %v2728_v49, %v2140_v48  ;;  %v2767_v48 = vld [vmem:[%s3089_s13 + $0x198] sm:$0xf0] }
  0x7a   : > { %v2281_v34 = vor.u32 %v2765_v29, %v2280_v28 }
  0x7c   : > { %1556 = vmatmul.bf16.gmra.mxu1 %v2253_v19  ;;  %1643 = vmatmul.bf16.gmra.mxu0 %v2265_v20  ;;  %v2865_v19 = vld [vmem:[%s3549_s1 + $0x308] sm:$0xff]  ;;  %v2137_v20 = vor.u32 %v2721_v17, %v2134_v18  ;;  %v2181_v17 = vor.u32 %v2733_v8, %v2178_v9 }
  0x7d   : > { %1769 = vmatpush.bf16.msrb.mxu1 %v2843_v46  ;;  %2925 = vmatpush.bf16.msrb.mxu2 %v2868_v63  ;;  %v2720_v46 = vld [vmem:[%s3089_s13 + $0x24] sm:$0xf] }
  0x7e   : > { %1720 = vmatmul.bf16.gmra.mxu3 %v2173_v24  ;;  %1856 = vmatpush.bf16.msrb.mxu0 %v2867_v3  ;;  %v2129_v52 = vor.u32 %v2720_v46, %v2126_v47  ;;  %v2296_v47 = vld [vmem:[%s3089_s13 + $0x168] sm:$0xf] }
  0x7f   : > { %1691 = vmatmul.bf16.gmra.mxu2 %v2169_v21  ;;  %v2864_v21 = vld [vmem:[%s3549_s1 + $0x300] sm:$0xff] }
  0x81   : > { %1770 = vmatpush.bf16.msrb.mxu1 %v2842_v50  ;;  %2926 = vmatpush.bf16.msrb.mxu2 %v2867_v3  ;;  %v2236_v50 = vld [vmem:[%s3089_s13 + $0xf8] sm:$0xf] }
  0x82   : > { %1857 = vmatpush.bf16.msrb.mxu0 %v2866_v5 }
  0x85   : > { %1771 = vmatpush.bf16.msrb.mxu1 %v2841_v1  ;;  %2927 = vmatpush.bf16.msrb.mxu2 %v2866_v5 }
  0x86   : > { %1858 = vmatpush.bf16.msrb.mxu0 %v2865_v19 }
  0x89   : > { %1772 = vmatpush.bf16.msrb.mxu1 %v2840_v4  ;;  %2928 = vmatpush.bf16.msrb.mxu2 %v2865_v19  ;;  %v2193_v19 = vor.u32 %v2741_v11, %v2192_v10 }
  0x8a   : > { %1859 = vmatpush.bf16.msrb.mxu0 %v2864_v21 }
  0x8c   : > { %1657 = vmatmul.bf16.vlgmr.msra.gmra.mxu1 %v2113_v37  ;;  %1744 = vmatmul.bf16.vlgmr.msra.gmra.mxu0 %v2125_v38  ;;  %v2185_v37 = vor.u32 %v2740_v31, %v2184_v30  ;;  %v2734_v38 = vld [vmem:[%s3089_s13 + $0x94] sm:$0xf] }
  0x8d   : > { %2929 = vmatpush.bf16.msrb.mxu2 %v2864_v21  ;;  %v2189_v41 = vor.u32 %v2734_v38, %v2186_v39  ;;  %v2746_v39 = vld [vmem:[%s3089_s13 + $0xf4] sm:$0xf] }
  0x8e   : > { %1725 = vmatmul.bf16.gmra.mxu3 %v2225_v45 }
  0x8f   : > { %1696 = vmatmul.bf16.gmra.mxu2 %v2221_v40 }
  0x9c   : > { %1662 = vmatmul.bf16.gmra.mxu1 %v2165_v57  ;;  %1749 = vmatmul.bf16.gmra.mxu0 %v2177_v58  ;;  %v2237_v57 = vor.u32 %v2753_v51, %v2236_v50  ;;  %v2747_v58 = vld [vmem:[%s3089_s13 + $0xfc] sm:$0xf] }
  0x9d   : > { %v2241_v63 = vor.u32 %v2747_v58, %v2238_v59 }
  0x9e   : > { %1730 = vmatmul.bf16.gmra.mxu3 %v2277_v0 }
  0x9f   : > { %1701 = vmatmul.bf16.gmra.mxu2 %v2273_v60 }
  0xa9   : > { %v3410_v14 = vpop.f32.mrf.mxu1  ;;  %v1513_v15 = vpop.f32.mrf.mxu0 }
  0xac   : > { %1667 = vmatmul.bf16.gmra.mxu1 %v2217_v12  ;;  %1754 = vmatmul.bf16.gmra.mxu0 %v2229_v13  ;;  %v2288_v13 = vld [vmem:[%s3089_s13 + $0x160] sm:$0xf] }
  0xae   : > { %1831 = vmatmul.bf16.vlgmr.msra.gmra.mxu3 %v2137_v20 }
  0xaf   : > { %1802 = vmatmul.bf16.vlgmr.msra.gmra.mxu2 %v2133_v16 }
  0xb1   : > { %v3420_v23 = vpop.f32.mrf.mxu1  ;;  %v1515_v24 = vpop.f32.mrf.mxu0 }
  0xb2   : > { %v1571_v22 = vpop.f32.mrf.mxu2  ;;  %v1600_v25 = vpop.f32.mrf.mxu3 }
  0xb9   : > { %v3428_v35 = vpop.f32.mrf.mxu1  ;;  %v1518_v36 = vpop.f32.mrf.mxu0 }
  0xba   : > { %v1573_v33 = vpop.f32.mrf.mxu2  ;;  %v1602_v40 = vpop.f32.mrf.mxu3 }
  0xbc   : > { %1672 = vmatmul.bf16.gmra.mxu1 %v2269_v32  ;;  %1759 = vmatmul.bf16.gmra.mxu0 %v2281_v34 }
  0xbe   : > { %1836 = vmatmul.bf16.gmra.mxu3 %v2189_v41  ;;  %v2244_v41 = vld [vmem:[%s3089_s13 + $0x100] sm:$0xf] }
  0xbf   : > { %1807 = vmatmul.bf16.gmra.mxu2 %v2185_v37 }
  0xc1   : > { %v3432_v43 = vpop.f32.mrf.mxu1  ;;  %v1520_v44 = vpop.f32.mrf.mxu0 }
  0xc2   : > { %v1576_v42 = vpop.f32.mrf.mxu2  ;;  %v1605_v45 = vpop.f32.mrf.mxu3 }
  0xc9   : > { %v1542_v55 = vpop.f32.mrf.mxu1  ;;  %v1629_v56 = vpop.f32.mrf.mxu0 }
  0xca   : > { %v1578_v53 = vpop.f32.mrf.mxu2  ;;  %v1543_v60 = vadd.f32 %v1542_v55, %v1513_v15  ;;  %v1607_v61 = vpop.f32.mrf.mxu3  ;;  %v2766_v15 = vld [vmem:[%s3089_s13 + $0x190] sm:$0xf0]  ;;  %v2297_v55 = vor.u32 %v2767_v48, %v2296_v47 }
  0xcc   : > { %v1572_v62 = vadd.f32 %v1571_v22, %v1543_v60  ;;  %1773 = vmatmul.bf16.vlgmr.msrb.gmra.mxu1 %v2129_v52  ;;  %1860 = vmatmul.bf16.vlgmr.msrb.gmra.mxu0 %v2141_v54  ;;  %v2289_v22 = vor.u32 %v2766_v15, %v2288_v13 }
  0xce   : > { %v1601_v0 = vadd.f32 %v1600_v25, %v1572_v62  ;;  %1841 = vmatmul.bf16.gmra.mxu3 %v2241_v63  ;;  %v2290_v25 = vld [vmem:[%s3089_s13 + $0x194] sm:$0xf0] }
  0xcf   : > { %1812 = vmatmul.bf16.gmra.mxu2 %v2237_v57 }
  0xd0   : > { %v3442_v1 = vadd.f32 %v1629_v56, %v1601_v0 }
  0xd1   : > { %v1544_v3 = vpop.f32.mrf.mxu1  ;;  %v1631_v4 = vpop.f32.mrf.mxu0 }
  0xd2   : > { %v1581_v2 = vpop.f32.mrf.mxu2  ;;  %v1545_v5 = vadd.f32 %v1544_v3, %v1515_v24  ;;  %v1610_v6 = vpop.f32.mrf.mxu3  ;;  %v2760_v24 = vld [vmem:[%s3089_s13 + $0x164] sm:$0xf]  ;;  %v2759_v3 = vld [vmem:[%s3089_s13 + $0x15c] sm:$0xf] }
  0xd3   : > { %v2293_v29 = vor.u32 %v2760_v24, %v2290_v25 }
  0xd4   : > { %v1574_v7 = vadd.f32 %v1573_v33, %v1545_v5 }
  0xd6   : > { %v1603_v12 = vadd.f32 %v1602_v40, %v1574_v7  ;;  %v2230_v40 = vld [vmem:[%s3089_s13 + $0x124] sm:$0xf0] }
  0xd7   : > { %v2233_v50 = vor.u32 %v2746_v39, %v2230_v40 }
  0xd8   : > { %v3450_v16 = vadd.f32 %v1631_v4, %v1603_v12  ;;  %v2282_v4 = vld [vmem:[%s3089_s13 + $0x18c] sm:$0xf0] }
  0xd9   : > { %v1547_v20 = vpop.f32.mrf.mxu1  ;;  %v1634_v21 = vpop.f32.mrf.mxu0  ;;  %v2285_v8 = vor.u32 %v2759_v3, %v2282_v4 }
  0xda   : > { %v1583_v18 = vpop.f32.mrf.mxu2  ;;  %v1548_v26 = vadd.f32 %v1547_v20, %v1518_v36  ;;  %v1612_v27 = vpop.f32.mrf.mxu3 }
  0xdc   : > { %v1577_v28 = vadd.f32 %v1576_v42, %v1548_v26  ;;  %1778 = vmatmul.bf16.gmra.mxu1 %v2181_v17  ;;  %1865 = vmatmul.bf16.gmra.mxu0 %v2193_v19  ;;  %v2754_v42 = vld [vmem:[%s3089_s13 + $0x130] sm:$0xf0]  ;;  %s2087_s13 = sshll.u32 %s3558_s9, 2 }
  0xdd   : > { %v2245_v51 = vor.u32 %v2754_v42, %v2244_v41  ;;  %s3501_s21 = scalar_lea.vmem %s3551_s3, %s2087_s13  ;;  %s3515_s25 = scalar_lea.vmem %s3552_s4, %s2087_s13 }
  0xde   : > { %v1606_v30 = vadd.f32 %v1605_v45, %v1577_v28  ;;  %1846 = vmatmul.bf16.gmra.mxu3 %v2293_v29 }
  0xdf   : > { %1817 = vmatmul.bf16.gmra.mxu2 %v2289_v22 }
  0xe0   : > { %v3454_v31 = vadd.f32 %v1634_v21, %v1606_v30 }
  0xe1   : > { %v1549_v33 = vpop.f32.mrf.mxu1  ;;  %v1636_v34 = vpop.f32.mrf.mxu0 }
  0xe2   : > { %v1586_v32 = vpop.f32.mrf.mxu2  ;;  %v1550_v36 = vadd.f32 %v1549_v33, %v1520_v44  ;;  %v1615_v37 = vpop.f32.mrf.mxu3 }
  0xe4   : > { %v1579_v38 = vadd.f32 %v1578_v53, %v1550_v36 }
  0xe6   : > { %v1608_v46 = vadd.f32 %v1607_v61, %v1579_v38 }
  0xe8   : > { %v3462_v49 = vadd.f32 %v1636_v34, %v1608_v46 }
  0xe9   : > { %v1552_v52 = vpop.f32.mrf.mxu1  ;;  %v1639_v54 = vpop.f32.mrf.mxu0 }
  0xea   : > { %v1588_v45 = vpop.f32.mrf.mxu2  ;;  %v1553_v44 = vadd.f32 %v1552_v52, %v3410_v14  ;;  %v1617_v53 = vpop.f32.mrf.mxu3 }
  0xec   : > { %v1582_v56 = vadd.f32 %v1581_v2, %v1553_v44  ;;  %1783 = vmatmul.bf16.gmra.mxu1 %v2233_v50  ;;  %1870 = vmatmul.bf16.gmra.mxu0 %v2245_v51 }
  0xee   : > { %v1611_v57 = vadd.f32 %v1610_v6, %v1582_v56 }
  0xef   : > { %1875 = vmatmul.bf16.vlgmr.msrb.gmra.mxu2 %v2297_v55 }
  0xf0   : > { %v1640_v58 = vadd.f32 %v1639_v54, %v1611_v57 }
  0xf1   : > { %v1554_v60 = vpop.f32.mrf.mxu1  ;;  %v1641_v61 = vpop.f32.mrf.mxu0 }
  0xf2   : > { %v1687_v59 = vpop.f32.mrf.mxu2  ;;  %v1555_v62 = vadd.f32 %v1554_v60, %v3420_v23  ;;  %v1716_v63 = vpop.f32.mrf.mxu3 }
  0xf4   : > { %v1584_v0 = vadd.f32 %v1583_v18, %v1555_v62 }
  0xf6   : > { %v1613_v5 = vadd.f32 %v1612_v27, %v1584_v0 }
  0xf8   : > { %v1642_v7 = vadd.f32 %v1641_v61, %v1613_v5 }
  0xf9   : > { %v1557_v9 = vpop.f32.mrf.mxu1  ;;  %v1644_v2 = vpop.f32.mrf.mxu0 }
  0xfa   : > { %v1689_v14 = vpop.f32.mrf.mxu2  ;;  %v1558_v10 = vadd.f32 %v1557_v9, %v3428_v35  ;;  %v3469_v11 = vpop.f32.mrf.mxu3 }
  0xfc   : > { %v1587_v6 = vadd.f32 %v1586_v32, %v1558_v10  ;;  %1788 = vmatmul.bf16.gmra.mxu1 %v2285_v8 }
  0xfe   : > { %v1616_v12 = vadd.f32 %v1615_v37, %v1587_v6 }
 0x100   : > { %v1645_v13 = vadd.f32 %v1644_v2, %v1616_v12 }
 0x101   : > { %v1559_v23 = vpop.f32.mrf.mxu1  ;;  %v1646_v17 = vpop.f32.mrf.mxu0 }
 0x102   : > { %v1692_v15 = vpop.f32.mrf.mxu2  ;;  %v1560_v18 = vadd.f32 %v1559_v23, %v3432_v43  ;;  %v1721_v19 = vpop.f32.mrf.mxu3 }
 0x104   : > { %v1589_v20 = vadd.f32 %v1588_v45, %v1560_v18 }
 0x106   : > { %v1618_v21 = vadd.f32 %v1617_v53, %v1589_v20 }
 0x108   : > { %v1647_v22 = vadd.f32 %v1646_v17, %v1618_v21 }
 0x109   : > { %v1658_v25 = vpop.f32.mrf.mxu1  ;;  %v1745_v26 = vpop.f32.mrf.mxu0 }
 0x10a   : > { %v1694_v24 = vpop.f32.mrf.mxu2  ;;  %v1659_v35 = vadd.f32 %v1658_v25, %v3442_v1  ;;  %v3473_v28 = vpop.f32.mrf.mxu3 }
 0x10c   : > { %v1688_v27 = vadd.f32 %v1687_v59, %v1659_v35 }
 0x10e   : > { %v1717_v29 = vadd.f32 %v1716_v63, %v1688_v27  ;;  %v3506_v27 = vld [vmem:[%s3550_s2] ss:$0 sm:$0xff] }
 0x110   : > { %v1746_v30 = vadd.f32 %v1745_v26, %v1717_v29 }
 0x111   : > { %v1660_v33 = vpop.f32.mrf.mxu1  ;;  %v1747_v34 = vpop.f32.mrf.mxu0 }
 0x112   : > { %v1697_v32 = vpop.f32.mrf.mxu2  ;;  %v1661_v36 = vadd.f32 %v1660_v33, %v3450_v16  ;;  %v1726_v37 = vpop.f32.mrf.mxu3 }
 0x114   : > { %v1690_v43 = vadd.f32 %v1689_v14, %v1661_v36 }
 0x119   : > { %v1663_v39 = vpop.f32.mrf.mxu1  ;;  %v1750_v40 = vpop.f32.mrf.mxu0 }
 0x11a   : > { %v1699_v38 = vpop.f32.mrf.mxu2  ;;  %v1664_v41 = vadd.f32 %v1663_v39, %v3454_v31  ;;  %v3477_v48 = vpop.f32.mrf.mxu3 }
 0x11c   : > { %v1693_v42 = vadd.f32 %v1692_v15, %v1664_v41 }
 0x11e   : > { %v1722_v46 = vadd.f32 %v1721_v19, %v1693_v42 }
 0x120   : > { %v1751_v1 = vadd.f32 %v1750_v40, %v1722_v46 }
 0x121   : > { %v1665_v50 = vpop.f32.mrf.mxu1  ;;  %v3479_v45 = vpop.f32.mrf.mxu0 }
 0x122   : > { %v1702_v47 = vpop.f32.mrf.mxu2  ;;  %v1666_v51 = vadd.f32 %v1665_v50, %v3462_v49  ;;  %v1731_v53 = vpop.f32.mrf.mxu3 }
 0x124   : > { %v1695_v52 = vadd.f32 %v1694_v24, %v1666_v51 }
 0x126   : > { %v1724_v42 = vadd.f32 %v3473_v28, %v1695_v52 }
 0x129   : > { %v1668_v54 = vpop.f32.mrf.mxu1  ;;  %v1755_v55 = vpop.f32.mrf.mxu0 }
 0x12a   : > { %v1704_v16 = vpop.f32.mrf.mxu2  ;;  %v1669_v44 = vadd.f32 %v1668_v54, %v1640_v58  ;;  %v3488_v0 = vpop.f32.mrf.mxu3 }
 0x12c   : > { %v1698_v56 = vadd.f32 %v1697_v32, %v1669_v44 }
 0x12e   : > { %v1727_v57 = vadd.f32 %v1726_v37, %v1698_v56 }
 0x130   : > { %v3482_v31 = vadd.f32 %v1755_v55, %v1727_v57  ;;  %v1753_v55 = vadd.f32 %v3479_v45, %v1724_v42  ;;  %v2908_v57 = vld [vmem:[%s3501_s21 + $0x8] sm:$0xff]  }
 0x131   : > { %v1670_v60 = vpop.f32.mrf.mxu1  ;;  %v3484_v61 = vpop.f32.mrf.mxu0 }
 0x132   : > { %v1803_v59 = vpop.f32.mrf.mxu2  ;;  %v1671_v62 = vadd.f32 %v1670_v60, %v1642_v7  ;;  %v1832_v14 = vpop.f32.mrf.mxu3 }
 0x134   : > { %v3486_v63 = vadd.f32 %v1699_v38, %v1671_v62 }
 0x139   : > { %v1673_v3 = vpop.f32.mrf.mxu1  ;;  %v1760_v4 = vpop.f32.mrf.mxu0 }
 0x13a   : > { %v1805_v49 = vpop.f32.mrf.mxu2  ;;  %v1674_v5 = vadd.f32 %v1673_v3, %v1645_v13  ;;  %v1834_v15 = vpop.f32.mrf.mxu3  ;;  %v1719_v13 = vadd.f32 %v3469_v11, %v1690_v43 }
 0x13c   : > { %v1703_v8 = vadd.f32 %v1702_v47, %v1674_v5  ;;  %v1748_v21 = vadd.f32 %v1747_v34, %v1719_v13 }
 0x13e   : > { %v1732_v58 = vadd.f32 %v1731_v53, %v1703_v8 }
 0x140   : > { %v3490_v9 = vadd.f32 %v1760_v4, %v1732_v58  ;;  %v2879_v4 = vunpack.c.h.bf16 %v2908_v57 }
 0x141   : > { %v1675_v10 = vpop.f32.mrf.mxu1  ;;  %v3492_v6 = vpop.f32.mrf.mxu0 }
 0x142   : > { %v1808_v2 = vpop.f32.mrf.mxu2  ;;  %v1676_v12 = vadd.f32 %v1675_v10, %v1647_v22  ;;  %v1837_v35 = vpop.f32.mrf.mxu3 }
 0x144   : > { %v3494_v7 = vadd.f32 %v1704_v16, %v1676_v12 }
 0x149   : > { %v1774_v23 = vpop.f32.mrf.mxu1  ;;  %v1861_v17 = vpop.f32.mrf.mxu0 }
 0x14a   : > { %v1775_v18 = vadd.f32 %v1774_v23, %v1746_v30  ;;  %v1810_v19 = vpop.f32.mrf.mxu2  ;;  %v2873_v30 = vld [vmem:[%s3501_s21] sm:$0xff]   ;;  %v1839_v51 = vpop.f32.mrf.mxu3 }
 0x14b   : > { %v2874_v36 = vunpack.c.l.bf16 %v2873_v30  ;;  %v2875_v37 = vunpack.c.h.bf16 %v2873_v30 }
 0x14c   : > { %v1804_v20 = vadd.f32 %v1803_v59, %v1775_v18 }
 0x14e   : > { %v1833_v24 = vadd.f32 %v1832_v14, %v1804_v20 }
 0x150   : > { %v1862_v11 = vadd.f32 %v1861_v17, %v1833_v24 }
 0x151   : > { %v1776_v25 = vpop.f32.mrf.mxu1  ;;  %v1863_v26 = vpop.f32.mrf.mxu0 }
 0x152   : > { %v1777_v22 = vadd.f32 %v1776_v25, %v1748_v21  ;;  %v1813_v32 = vpop.f32.mrf.mxu2  ;;  %v1881_v34 = vadd.f32 %v3506_v27, %v1862_v11  ;;  %v1842_v60 = vpop.f32.mrf.mxu3 }
 0x154   : > { %v1806_v29 = vadd.f32 %v1805_v49, %v1777_v22  ;;  %v1924_v46 = vadd.f32 %v2874_v36, %v1881_v34  ;;  %v2878_v49 = vunpack.c.l.bf16 %v2908_v57 }
 0x156   : > { %v1835_v33 = vadd.f32 %v1834_v15, %v1806_v29 }
 0x158   : > { %v1864_v43 = vadd.f32 %v1863_v26, %v1835_v33  ;;  %v1734_v33 = vadd.f32 %v3488_v0, %v3494_v7 }
 0x159   : > { %v1779_v38 = vpop.f32.mrf.mxu1  ;;  %v1866_v39 = vpop.f32.mrf.mxu0 }
 0x15a   : > { %v1882_v40 = vadd.f32 %v3506_v27, %v1864_v43  ;;  %v1780_v41 = vadd.f32 %v1779_v38, %v1751_v1  ;;  %v1815_v54 = vpop.f32.mrf.mxu2 }
 0x15c   : > { %v1925_v47 = vadd.f32 %v2875_v37, %v1882_v40  ;;  %v1809_v50 = vadd.f32 %v1808_v2, %v1780_v41  ;;  %v1729_v2 = vadd.f32 %v3477_v48, %v3486_v63 }
 0x15e   : > { %v2891_v16 = vpack.c.bf16 %v1925_v47, %v1924_v46  ;;  %v1838_v44 = vadd.f32 %v1837_v35, %v1809_v50  ;;  %v1758_v17 = vadd.f32 %v3484_v61, %v1729_v2  ;;  %v2910_v50 = vld [vmem:[%s3501_s21 + $0x18] sm:$0xff]  }
 0x15f   : > { %v2886_v7 = vunpack.c.l.bf16 %v2910_v50 }
 0x160   : > { %2892 = vst [vmem:[%s3515_s25] sm:$0xff] %v2891_v16   ;;  %v1867_v52 = vadd.f32 %v1866_v39, %v1838_v44  ;;  %v1763_v39 = vadd.f32 %v3492_v6, %v1734_v33 }
 0x161   : > { %v1781_v1 = vpop.f32.mrf.mxu1  ;;  %v1868_v53 = vpop.f32.mrf.mxu0 }
 0x162   : > { %v1782_v28 = vadd.f32 %v1781_v1, %v1753_v55  ;;  %v1883_v62 = vadd.f32 %v3506_v27, %v1867_v52  ;;  %v1818_v5 = vpop.f32.mrf.mxu2  ;;  %v2887_v55 = vunpack.c.h.bf16 %v2910_v50 }
 0x164   : > { %v1811_v56 = vadd.f32 %v1810_v19, %v1782_v28  ;;  %v1926_v10 = vadd.f32 %v2878_v49, %v1883_v62  ;;  %v1844_v19 = vpop.f32.mrf.mxu3 }
 0x166   : > { %v1840_v59 = vadd.f32 %v1839_v51, %v1811_v56 }
 0x168   : > { %v1869_v3 = vadd.f32 %v1868_v53, %v1840_v59 }
 0x169   : > { %v1784_v8 = vpop.f32.mrf.mxu1  ;;  %v1871_v14 = vpop.f32.mrf.mxu0 }
 0x16a   : > { %v1884_v45 = vadd.f32 %v3506_v27, %v1869_v3  ;;  %v1785_v58 = vadd.f32 %v1784_v8, %v3482_v31  ;;  %v1820_v21 = vpop.f32.mrf.mxu2  ;;  %v2909_v31 = vld [vmem:[%s3501_s21 + $0x10] sm:$0xff]  }
 0x16b   : > { %v2882_v63 = vunpack.c.l.bf16 %v2909_v31  ;;  %v2883_v11 = vunpack.c.h.bf16 %v2909_v31 }
 0x16c   : > { %v1927_v12 = vadd.f32 %v2879_v4, %v1884_v45  ;;  %v1814_v15 = vadd.f32 %v1813_v32, %v1785_v58  ;;  %v1847_v32 = vpop.f32.mrf.mxu3 }
 0x16e   : > { %v2896_v23 = vpack.c.bf16 %v1927_v12, %v1926_v10  ;;  %v1843_v18 = vadd.f32 %v1842_v60, %v1814_v15 }
 0x170   : > { %2911 = vst [vmem:[%s3515_s25 + $0x8] sm:$0xff] %v2896_v23   ;;  %v1872_v24 = vadd.f32 %v1871_v14, %v1843_v18 }
 0x171   : > { %v1786_v13 = vpop.f32.mrf.mxu1  ;;  %v1873_v26 = vpop.f32.mrf.mxu0 }
 0x172   : > { %v1787_v20 = vadd.f32 %v1786_v13, %v1758_v17  ;;  %v1885_v48 = vadd.f32 %v3506_v27, %v1872_v24  ;;  %v1876_v37 = vpop.f32.mrf.mxu2 }
 0x174   : > { %v1816_v25 = vadd.f32 %v1815_v54, %v1787_v20  ;;  %v1928_v34 = vadd.f32 %v2882_v63, %v1885_v48 }
 0x176   : > { %v1845_v22 = vadd.f32 %v1844_v19, %v1816_v25 }
 0x178   : > { %v1874_v35 = vadd.f32 %v1873_v26, %v1845_v22 }
 0x179   : > { %v1789_v29 = vpop.f32.mrf.mxu1 }
 0x17a   : > { %v1886_v61 = vadd.f32 %v3506_v27, %v1874_v35  ;;  %v1790_v30 = vadd.f32 %v1789_v29, %v3490_v9  ;;  %v1849_v9 = vpop.f32.mrf.mxu3  ;;  %v1878_v16 = vpop.f32.mrf.mxu2 }
 0x17c   : > { %v1929_v36 = vadd.f32 %v2883_v11, %v1886_v61  ;;  %v1819_v43 = vadd.f32 %v1818_v5, %v1790_v30 }
 0x17e   : > { %v2901_v38 = vpack.c.bf16 %v1929_v36, %v1928_v34  ;;  %v1848_v40 = vadd.f32 %v1847_v32, %v1819_v43 }
 0x180   : > { %2912 = vst [vmem:[%s3515_s25 + $0x10] sm:$0xff] %v2901_v38   ;;  %v1877_v46 = vadd.f32 %v1876_v37, %v1848_v40 }
 0x181   : > { %v1791_v41 = vpop.f32.mrf.mxu1 }
 0x182   : > { %v1792_v42 = vadd.f32 %v1791_v41, %v1763_v39  ;;  %v1887_v0 = vadd.f32 %v3506_v27, %v1877_v46 }
 0x184   : > { %v1821_v47 = vadd.f32 %v1820_v21, %v1792_v42  ;;  %v1930_v1 = vadd.f32 %v2886_v7, %v1887_v0 }
 0x186   : > { %v1850_v51 = vadd.f32 %v1849_v9, %v1821_v47 }
 0x188   : > { %v1879_v54 = vadd.f32 %v1878_v16, %v1850_v51 }
 0x18a   : > { %v1888_v44 = vadd.f32 %v3506_v27, %v1879_v54 }
 0x18c   : > { %v1931_v6 = vadd.f32 %v2887_v55, %v1888_v44 }
 0x18e   : > { %v2906_v53 = vpack.c.bf16 %v1931_v6, %v1930_v1 }
 0x190   : > { %2913 = vst [vmem:[%s3515_s25 + $0x18] sm:$0xff] %v2906_v53  }
 0x191 PF: > { %s14_s17 = sadd.s32 1, %s2978_s17   ;;  %s3553_s15 = smov %s2974_s16 }
 0x192   : > { %p11_p5 = scmp.ge.s32.totalorder %s14_s17, 4   ;;  %s3554_s16 = smov %s3556_s18 }
 0x194   :  { %13 = sbr.rel (!%p11_p5) target bundleno = 2 (0x2), region = 83 }

// kernel: dblock_fwd.7
= control target key start
LH: loop header
LB: loop body
LE: loop exit
PB: predicated region body
PF: predicated region fallthrough
CT: control target
= control target key end

     0   :  { %s2888_s12 = smov 0   ;;  %s2890_s13 = smov 0   ;;  %s3422_s0 = inlined_call_operand.vmem [shape: bf16[128,1664], index: 0, kind: input, shape index: {}]   ;;  %s3423_s1 = inlined_call_operand.vmem [shape: bf16[1664,128], index: 1, kind: input, shape index: {}]   ;;  %s3424_s2 = inlined_call_operand.vmem [shape: f32[1,128], index: 2, kind: input, shape index: {}]   ;;  %s3425_s3 = inlined_call_operand.vmem [shape: bf16[128,128], index: 3, kind: output, shape index: {}]  }
   0x1   :  { %s2892_s14 = smov 0  }
   0x2 LB: > { %s32_s15 = sadd.s32 1, %s2862_s13  ;;  %p1992_p0 = scmp.ge.s32.totalorder %s2866_s14, 1  ;;  %s2866_s14 = sphi %s2892_s14, %s13_s14   ;;  %s2862_s13 = sphi %s2890_s13, %s3427_s13   ;;  %s2858_s12 = sphi %s2888_s12, %s3426_s12  }
   0x3   : > { %p34_p1 = scmp.ge.s32.totalorder %s32_s15, 2  ;;  %p191_p2 = scmp.lt.s32.totalorder %s2866_s14, 3 }
   0x5   : > { %s3429_s15 = smov (%p34_p1, %s32_s15), 0  ;;  %p192_p3 = pnand %p1992_p0, %p191_p2 }
   0x6   : > { %s1993_s5 = sshll.u32 (!%p192_p3), %s2858_s12, 3 }
   0x7   : > { %195 = sbr.rel (%p192_p3) target bundleno = 401 (0x191), region = 32  ;;  %p236_p4 = scmp.lt.s32.totalorder (!%p192_p3), %s1993_s5, 15 }
   0xc   : > { %v2682_v0 = vld [vmem:[%s3423_s1 + $0x38] sm:$0xff]  ;;  %v2681_v2 = vld [vmem:[%s3423_s1 + $0x30] sm:$0xff]  ;;  %v2680_v6 = vld [vmem:[%s3423_s1 + $0x28] sm:$0xff]  ;;  %s3431_s5 = smov (!%p236_p4, %s1993_s5), 15 }
   0xd   : > { %v2698_v1 = vld [vmem:[%s3423_s1 + $0xb8] sm:$0xff]  ;;  %2802 = vmatpush.bf16.msra.mxu1 %v2682_v0  ;;  %1444 = vmatpush.bf16.msra.mxu0 %v2682_v0  ;;  %v2697_v3 = vld [vmem:[%s3423_s1 + $0xb0] sm:$0xff]  ;;  %v2696_v7 = vld [vmem:[%s3423_s1 + $0xa8] sm:$0xff]  ;;  %s2818_s25 = smul.u32 52, %s3431_s5  ;;  %s1996_s29 = sshll.u32 %s3431_s5, 2 }
   0xe   : > { %1502 = vmatpush.bf16.msra.mxu2 %v2698_v1  ;;  %v2706_v4 = vld [vmem:[%s3423_s1 + $0xf8] sm:$0xff]  ;;  %v2705_v5 = vld [vmem:[%s3423_s1 + $0xf0] sm:$0xff]  ;;  %v2704_v8 = vld [vmem:[%s3423_s1 + $0xe8] sm:$0xff]  ;;  %s3392_s6 = scalar_lea.vmem %s3425_s3, %s1996_s29 }
   0xf   : > { %1531 = vmatpush.bf16.msra.mxu3 %v2706_v4  ;;  %v2679_v9 = vld [vmem:[%s3423_s1 + $0x20] sm:$0xff]  ;;  %v2678_v12 = vld [vmem:[%s3423_s1 + $0x18] sm:$0xff]  ;;  %v2677_v15 = vld [vmem:[%s3423_s1 + $0x10] sm:$0xff]  ;;  %s2972_s8 = scalar_lea.vmem %s3422_s0, %s2818_s25 }
  0x10   : > { %v2695_v10 = vld [vmem:[%s3423_s1 + $0xa0] sm:$0xff]  ;;  %v2694_v13 = vld [vmem:[%s3423_s1 + $0x98] sm:$0xff]  ;;  %v2693_v16 = vld [vmem:[%s3423_s1 + $0x90] sm:$0xff] }
  0x11   : > { %2803 = vmatpush.bf16.msra.mxu1 %v2681_v2  ;;  %1445 = vmatpush.bf16.msra.mxu0 %v2681_v2  ;;  %v2703_v11 = vld [vmem:[%s3423_s1 + $0xe0] sm:$0xff]  ;;  %v2702_v14 = vld [vmem:[%s3423_s1 + $0xd8] sm:$0xff]  ;;  %v2701_v17 = vld [vmem:[%s3423_s1 + $0xd0] sm:$0xff] }
  0x12   : > { %1503 = vmatpush.bf16.msra.mxu2 %v2697_v3  ;;  %v2676_v18 = vld [vmem:[%s3423_s1 + $0x8] sm:$0xff]  ;;  %v2675_v20 = vld [vmem:[%s3423_s1] sm:$0xff]  ;;  %v2103_v21 = vld [vmem:[%s2972_s8 + $0xd0] sm:$0xf] }
  0x13   : > { %1532 = vmatpush.bf16.msra.mxu3 %v2705_v5  ;;  %v2692_v19 = vld [vmem:[%s3423_s1 + $0x88] sm:$0xff]  ;;  %v2690_v22 = vld [vmem:[%s3423_s1 + $0x78] sm:$0xff]  ;;  %v2655_v24 = vld [vmem:[%s2972_s8 + $0x100] sm:$0xf0] }
  0x14   : > { %v2700_v23 = vld [vmem:[%s3423_s1 + $0xc8] sm:$0xff]  ;;  %v1999_v25 = vld [vmem:[%s2972_s8] sm:$0xf]  ;;  %v2629_v26 = vld [vmem:[%s2972_s8 + $0x30] sm:$0xf0]  ;;  %v2104_v32 = vor.u32 %v2655_v24, %v2103_v21 }
  0x15   : > { %2804 = vmatpush.bf16.msra.mxu1 %v2680_v6  ;;  %1446 = vmatpush.bf16.msra.mxu0 %v2680_v6  ;;  %v2691_v27 = vld [vmem:[%s3423_s1 + $0x80] sm:$0xff]  ;;  %v2007_v28 = vld [vmem:[%s2972_s8 + $0x8] sm:$0xf]  ;;  %v2630_v29 = vld [vmem:[%s2972_s8 + $0x38] sm:$0xf0]  ;;  %v2000_v33 = vor.u32 %v2629_v26, %v1999_v25 }
  0x16   : > { %1504 = vmatpush.bf16.msra.mxu2 %v2696_v7  ;;  %v2714_v30 = vld [vmem:[%s3423_s1 + $0x138] sm:$0xff]  ;;  %v2008_v34 = vor.u32 %v2630_v29, %v2007_v28  ;;  %v2699_v35 = vld [vmem:[%s3423_s1 + $0xc0] sm:$0xff]  ;;  %v2624_v36 = vld [vmem:[%s2972_s8 + $0xc] sm:$0xf] }
  0x17   : > { %1533 = vmatpush.bf16.msra.mxu3 %v2704_v8  ;;  %v2730_v31 = vld [vmem:[%s3423_s1 + $0x1b8] sm:$0xff]  ;;  %v2009_v37 = vld [vmem:[%s2972_s8 + $0x3c] sm:$0xf0]  ;;  %v2689_v38 = vld [vmem:[%s3423_s1 + $0x70] sm:$0xff] }
  0x18   : > { %v2738_v39 = vld [vmem:[%s3423_s1 + $0x1f8] sm:$0xff]  ;;  %v2713_v40 = vld [vmem:[%s3423_s1 + $0x130] sm:$0xff]  ;;  %v2012_v42 = vor.u32 %v2624_v36, %v2009_v37  ;;  %v2688_v43 = vld [vmem:[%s3423_s1 + $0x68] sm:$0xff] }
  0x19   : > { %2805 = vmatpush.bf16.msra.mxu1 %v2679_v9  ;;  %1447 = vmatpush.bf16.msra.mxu0 %v2679_v9  ;;  %v2729_v41 = vld [vmem:[%s3423_s1 + $0x1b0] sm:$0xff]  ;;  %v2712_v45 = vld [vmem:[%s3423_s1 + $0x128] sm:$0xff]  ;;  %v2687_v47 = vld [vmem:[%s3423_s1 + $0x60] sm:$0xff] }
  0x1a   : > { %1505 = vmatpush.bf16.msra.mxu2 %v2695_v10  ;;  %v2737_v44 = vld [vmem:[%s3423_s1 + $0x1f0] sm:$0xff]  ;;  %v2728_v46 = vld [vmem:[%s3423_s1 + $0x1a8] sm:$0xff]  ;;  %v2711_v49 = vld [vmem:[%s3423_s1 + $0x120] sm:$0xff] }
  0x1b   : > { %1534 = vmatpush.bf16.msra.mxu3 %v2703_v11  ;;  %v2736_v48 = vld [vmem:[%s3423_s1 + $0x1e8] sm:$0xff]  ;;  %v2727_v50 = vld [vmem:[%s3423_s1 + $0x1a0] sm:$0xff]  ;;  %v2155_v51 = vld [vmem:[%s2972_s8 + $0x138] sm:$0xf] }
  0x1c   : > { %v2668_v52 = vld [vmem:[%s2972_s8 + $0x168] sm:$0xf0]  ;;  %v2051_v53 = vld [vmem:[%s2972_s8 + $0x68] sm:$0xf]  ;;  %v2642_v54 = vld [vmem:[%s2972_s8 + $0x98] sm:$0xf0] }
  0x1d   : > { %2806 = vmatpush.bf16.msra.mxu1 %v2678_v12  ;;  %1448 = vmatpush.bf16.msra.mxu0 %v2678_v12  ;;  %v2686_v55 = vld [vmem:[%s3423_s1 + $0x58] sm:$0xff]  ;;  %v2059_v56 = vld [vmem:[%s2972_s8 + $0x70] sm:$0xf]  ;;  %v2643_v57 = vld [vmem:[%s2972_s8 + $0xa0] sm:$0xf0]  ;;  %v2156_v59 = vor.u32 %v2668_v52, %v2155_v51  ;;  %v2052_v60 = vor.u32 %v2642_v54, %v2051_v53 }
  0x1e   : > { %1506 = vmatpush.bf16.msra.mxu2 %v2694_v13  ;;  %v2710_v58 = vld [vmem:[%s3423_s1 + $0x118] sm:$0xff]  ;;  %v2060_v61 = vor.u32 %v2643_v57, %v2059_v56  ;;  %v2637_v62 = vld [vmem:[%s2972_s8 + $0x74] sm:$0xf]  ;;  %v2061_v63 = vld [vmem:[%s2972_s8 + $0xa4] sm:$0xf0] }
  0x1f   : > { %1535 = vmatpush.bf16.msra.mxu3 %v2702_v14  ;;  %v2685_v0 = vld [vmem:[%s3423_s1 + $0x50] sm:$0xff]  ;;  %v2064_v2 = vor.u32 %v2637_v62, %v2061_v63  ;;  %v2726_v3 = vld [vmem:[%s3423_s1 + $0x198] sm:$0xff]  ;;  %v2684_v4 = vld [vmem:[%s3423_s1 + $0x48] sm:$0xff] }
  0x20   : > { %v2709_v1 = vld [vmem:[%s3423_s1 + $0x110] sm:$0xff]  ;;  %v2735_v5 = vld [vmem:[%s3423_s1 + $0x1e0] sm:$0xff]  ;;  %v2708_v6 = vld [vmem:[%s3423_s1 + $0x108] sm:$0xff] }
  0x21   : > { %2807 = vmatpush.bf16.msra.mxu1 %v2677_v15  ;;  %1449 = vmatpush.bf16.msra.mxu0 %v2677_v15  ;;  %v2725_v7 = vld [vmem:[%s3423_s1 + $0x190] sm:$0xff]  ;;  %v2734_v8 = vld [vmem:[%s3423_s1 + $0x1d8] sm:$0xff]  ;;  %v2683_v9 = vld [vmem:[%s3423_s1 + $0x40] sm:$0xff] }
  0x22   : > { %1507 = vmatpush.bf16.msra.mxu2 %v2693_v16  ;;  %v2722_v10 = vld [vmem:[%s3423_s1 + $0x178] sm:$0xff]  ;;  %v2707_v11 = vld [vmem:[%s3423_s1 + $0x100] sm:$0xff]  ;;  %v2015_v15 = vld [vmem:[%s2972_s8 + $0x10] sm:$0xf] }
  0x23   : > { %1536 = vmatpush.bf16.msra.mxu3 %v2701_v17  ;;  %v2623_v12 = vld [vmem:[%s2972_s8 + $0x4] sm:$0xf]  ;;  %v2746_v13 = vld [vmem:[%s3423_s1 + $0x238] sm:$0xff]  ;;  %v2113_v24 = vld [vmem:[%s2972_s8 + $0x10c] sm:$0xf0] }
  0x24   : > { %v2001_v14 = vld [vmem:[%s2972_s8 + $0x34] sm:$0xf0]  ;;  %v2631_v16 = vld [vmem:[%s2972_s8 + $0x40] sm:$0xf0]  ;;  %v2745_v25 = vld [vmem:[%s3423_s1 + $0x230] sm:$0xff] }
  0x25   : > { %2808 = vmatpush.bf16.msra.mxu1 %v2676_v18  ;;  %1450 = vmatpush.bf16.msra.mxu0 %v2676_v18  ;;  %v2111_v17 = vld [vmem:[%s2972_s8 + $0xd8] sm:$0xf]  ;;  %v2656_v18 = vld [vmem:[%s2972_s8 + $0x108] sm:$0xf0]  ;;  %v2016_v21 = vor.u32 %v2631_v16, %v2015_v15  ;;  %v2723_v29 = vld [vmem:[%s3423_s1 + $0x180] sm:$0xff] }
  0x26   : > { %1508 = vmatpush.bf16.msra.mxu2 %v2692_v19  ;;  %v2721_v19 = vld [vmem:[%s3423_s1 + $0x170] sm:$0xff]  ;;  %v2720_v26 = vld [vmem:[%s3423_s1 + $0x168] sm:$0xff]  ;;  %v2053_v37 = vld [vmem:[%s2972_s8 + $0x9c] sm:$0xf0] }
  0x27   : > { %1537 = vmatpush.bf16.msra.mxu3 %v2700_v23  ;;  %v2650_v23 = vld [vmem:[%s2972_s8 + $0xdc] sm:$0xf]  ;;  %v2636_v36 = vld [vmem:[%s2972_s8 + $0x6c] sm:$0xf]  ;;  %v2731_v51 = vld [vmem:[%s3423_s1 + $0x1c0] sm:$0xff] }
  0x28   : > { %v2116_v28 = vor.u32 %v2650_v23, %v2113_v24  ;;  %v2742_v52 = vld [vmem:[%s3423_s1 + $0x218] sm:$0xff]  ;;  %v2715_v53 = vld [vmem:[%s3423_s1 + $0x140] sm:$0xff]  ;;  %v2761_v54 = vld [vmem:[%s3423_s1 + $0x2b0] sm:$0xff] }
  0x29   : > { %2809 = vmatpush.bf16.msra.mxu1 %v2675_v20  ;;  %1451 = vmatpush.bf16.msra.mxu0 %v2675_v20  ;;  %v2004_v20 = vor.u32 %v2623_v12, %v2001_v14  ;;  %v2770_v56 = vld [vmem:[%s3423_s1 + $0x2f8] sm:$0xff]  ;;  %v2649_v57 = vld [vmem:[%s2972_s8 + $0xd4] sm:$0xf]  ;;  %v2632_v63 = vld [vmem:[%s2972_s8 + $0x48] sm:$0xf0] }
  0x2a   : > { %1509 = vmatpush.bf16.msra.mxu2 %v2691_v27  ;;  %v2724_v27 = vld [vmem:[%s3423_s1 + $0x188] sm:$0xff]  ;;  %v2023_v62 = vld [vmem:[%s2972_s8 + $0x18] sm:$0xf]  ;;  %v2157_v14 = vld [vmem:[%s2972_s8 + $0x16c] sm:$0xf0] }
  0x2b   : > { %1538 = vmatpush.bf16.msra.mxu3 %v2699_v35  ;;  %v2718_v35 = vld [vmem:[%s3423_s1 + $0x158] sm:$0xff]  ;;  %v2768_v12 = vld [vmem:[%s3423_s1 + $0x2e8] sm:$0xff] }
  0x2c   : > { %1462 = vmatmul.bf16.vlgmr.msra.gmra.mxu1 %v2104_v32  ;;  %1452 = vmatmul.bf16.vlgmr.msra.gmra.mxu0 %v2000_v33  ;;  %v2719_v32 = vld [vmem:[%s3423_s1 + $0x160] sm:$0xff]  ;;  %v2732_v33 = vld [vmem:[%s3423_s1 + $0x1c8] sm:$0xff]  ;;  %v2670_v16 = vld [vmem:[%s2972_s8 + $0x178] sm:$0xf0] }
  0x2d   : > { %1473 = vmatpush.bf16.msrb.mxu1 %v2690_v22  ;;  %1560 = vmatpush.bf16.msrb.mxu0 %v2714_v30  ;;  %v2112_v22 = vor.u32 %v2656_v18, %v2111_v17  ;;  %v2733_v30 = vld [vmem:[%s3423_s1 + $0x1d0] sm:$0xff]  ;;  %v2171_v15 = vld [vmem:[%s2972_s8 + $0x148] sm:$0xf]  ;;  %v2075_v17 = vld [vmem:[%s2972_s8 + $0x80] sm:$0xf] }
  0x2e   : > { %1618 = vmatpush.bf16.msrb.mxu2 %v2730_v31  ;;  %1539 = vmatmul.bf16.vlgmr.msra.gmra.mxu3 %v2012_v42  ;;  %v2744_v31 = vld [vmem:[%s3423_s1 + $0x228] sm:$0xff]  ;;  %v2717_v42 = vld [vmem:[%s3423_s1 + $0x150] sm:$0xff]  ;;  %v2077_v23 = vld [vmem:[%s2972_s8 + $0xb4] sm:$0xf0] }
  0x2f   : > { %1510 = vmatmul.bf16.vlgmr.msra.gmra.mxu2 %v2008_v34  ;;  %1647 = vmatpush.bf16.msrb.mxu3 %v2738_v39  ;;  %v2743_v34 = vld [vmem:[%s3423_s1 + $0x220] sm:$0xff]  ;;  %v2644_v39 = vld [vmem:[%s2972_s8 + $0xa8] sm:$0xf0]  ;;  %v2645_v18 = vld [vmem:[%s2972_s8 + $0xb0] sm:$0xf0] }
  0x31   : > { %1474 = vmatpush.bf16.msrb.mxu1 %v2689_v38  ;;  %1561 = vmatpush.bf16.msrb.mxu0 %v2713_v40  ;;  %v2067_v38 = vld [vmem:[%s2972_s8 + $0x78] sm:$0xf]  ;;  %v2163_v40 = vld [vmem:[%s2972_s8 + $0x140] sm:$0xf] }
  0x32   : > { %1619 = vmatpush.bf16.msrb.mxu2 %v2729_v41  ;;  %v2669_v41 = vld [vmem:[%s2972_s8 + $0x170] sm:$0xf0] }
  0x33   : > { %1648 = vmatpush.bf16.msrb.mxu3 %v2737_v44  ;;  %v2068_v44 = vor.u32 %v2644_v39, %v2067_v38  ;;  %v2652_v39 = vld [vmem:[%s2972_s8 + $0xec] sm:$0xf] }
  0x35   : > { %1475 = vmatpush.bf16.msrb.mxu1 %v2688_v43  ;;  %1562 = vmatpush.bf16.msrb.mxu0 %v2712_v45  ;;  %v2056_v43 = vor.u32 %v2636_v36, %v2053_v37  ;;  %v2164_v45 = vor.u32 %v2669_v41, %v2163_v40  ;;  %v2658_v36 = vld [vmem:[%s2972_s8 + $0x118] sm:$0xf0]  ;;  %v2129_v41 = vld [vmem:[%s2972_s8 + $0x11c] sm:$0xf0] }
  0x36   : > { %1620 = vmatpush.bf16.msrb.mxu2 %v2728_v46  ;;  %v2663_v46 = vld [vmem:[%s2972_s8 + $0x144] sm:$0xf] }
  0x37   : > { %1649 = vmatpush.bf16.msrb.mxu3 %v2736_v48 }
  0x39   : > { %1476 = vmatpush.bf16.msrb.mxu1 %v2687_v47  ;;  %1563 = vmatpush.bf16.msrb.mxu0 %v2711_v49  ;;  %v2165_v47 = vld [vmem:[%s2972_s8 + $0x174] sm:$0xf0]  ;;  %v2716_v49 = vld [vmem:[%s3423_s1 + $0x148] sm:$0xff] }
  0x3a   : > { %1621 = vmatpush.bf16.msrb.mxu2 %v2727_v50  ;;  %v2168_v48 = vor.u32 %v2663_v46, %v2165_v47  ;;  %v2762_v50 = vld [vmem:[%s3423_s1 + $0x2b8] sm:$0xff]  ;;  %v2755_v47 = vld [vmem:[%s3423_s1 + $0x280] sm:$0xff] }
  0x3b   : > { %1650 = vmatpush.bf16.msrb.mxu3 %v2735_v5  ;;  %v2750_v46 = vld [vmem:[%s3423_s1 + $0x258] sm:$0xff] }
  0x3c   : > { %1467 = vmatmul.bf16.gmra.mxu1 %v2156_v59  ;;  %1457 = vmatmul.bf16.gmra.mxu0 %v2052_v60  ;;  %v2105_v59 = vld [vmem:[%s2972_s8 + $0x104] sm:$0xf0]  ;;  %v2119_v60 = vld [vmem:[%s2972_s8 + $0xe0] sm:$0xf] }
  0x3d   : > { %1477 = vmatpush.bf16.msrb.mxu1 %v2686_v55  ;;  %1564 = vmatpush.bf16.msrb.mxu0 %v2710_v58  ;;  %v2741_v55 = vld [vmem:[%s3423_s1 + $0x210] sm:$0xff]  ;;  %v2740_v58 = vld [vmem:[%s3423_s1 + $0x208] sm:$0xff] }
  0x3e   : > { %1622 = vmatpush.bf16.msrb.mxu2 %v2726_v3  ;;  %1544 = vmatmul.bf16.gmra.mxu3 %v2064_v2  ;;  %v2024_v2 = vor.u32 %v2632_v63, %v2023_v62  ;;  %v2626_v3 = vld [vmem:[%s2972_s8 + $0x1c] sm:$0xf]  ;;  %v2764_v62 = vld [vmem:[%s3423_s1 + $0x2c8] sm:$0xff]  ;;  %v2775_v63 = vld [vmem:[%s3423_s1 + $0x320] sm:$0xff] }
  0x3f   : > { %1515 = vmatmul.bf16.gmra.mxu2 %v2060_v61  ;;  %1651 = vmatpush.bf16.msrb.mxu3 %v2734_v8  ;;  %v2657_v61 = vld [vmem:[%s2972_s8 + $0x110] sm:$0xf0]  ;;  %v2739_v8 = vld [vmem:[%s3423_s1 + $0x200] sm:$0xff] }
  0x41   : > { %1478 = vmatpush.bf16.msrb.mxu1 %v2685_v0  ;;  %1565 = vmatpush.bf16.msrb.mxu0 %v2709_v1  ;;  %v2108_v0 = vor.u32 %v2649_v57, %v2105_v59  ;;  %v2120_v1 = vor.u32 %v2657_v61, %v2119_v60  ;;  %v2665_v59 = vld [vmem:[%s2972_s8 + $0x154] sm:$0xf]  ;;  %v2181_v61 = vld [vmem:[%s2972_s8 + $0x184] sm:$0xf0] }
  0x42   : > { %1623 = vmatpush.bf16.msrb.mxu2 %v2725_v7  ;;  %v2760_v7 = vld [vmem:[%s3423_s1 + $0x2a8] sm:$0xff] }
  0x43   : > { %1652 = vmatpush.bf16.msrb.mxu3 %v2733_v30  ;;  %v2757_v30 = vld [vmem:[%s3423_s1 + $0x290] sm:$0xff] }
  0x45   : > { %1479 = vmatpush.bf16.msrb.mxu1 %v2684_v4  ;;  %1566 = vmatpush.bf16.msrb.mxu0 %v2708_v6  ;;  %v2025_v4 = vld [vmem:[%s2972_s8 + $0x4c] sm:$0xf0]  ;;  %v2754_v6 = vld [vmem:[%s3423_s1 + $0x278] sm:$0xff] }
  0x46   : > { %1624 = vmatpush.bf16.msrb.mxu2 %v2724_v27  ;;  %v2028_v5 = vor.u32 %v2626_v3, %v2025_v4  ;;  %v2767_v27 = vld [vmem:[%s3423_s1 + $0x2e0] sm:$0xff]  ;;  %v2774_v3 = vld [vmem:[%s3423_s1 + $0x318] sm:$0xff] }
  0x47   : > { %1653 = vmatpush.bf16.msrb.mxu3 %v2732_v33  ;;  %v2031_v33 = vld [vmem:[%s2972_s8 + $0x20] sm:$0xf] }
  0x48   : > { %v2747_v4 = vld [vmem:[%s3423_s1 + $0x240] sm:$0xff] }
  0x49   : > { %1480 = vmatpush.bf16.msrb.mxu1 %v2683_v9  ;;  %1567 = vmatpush.bf16.msrb.mxu0 %v2707_v11  ;;  %v2769_v9 = vld [vmem:[%s3423_s1 + $0x2f0] sm:$0xff]  ;;  %v2759_v11 = vld [vmem:[%s3423_s1 + $0x2a0] sm:$0xff] }
  0x4a   : > { %1625 = vmatpush.bf16.msrb.mxu2 %v2723_v29  ;;  %v2751_v29 = vld [vmem:[%s3423_s1 + $0x260] sm:$0xff] }
  0x4b   : > { %1654 = vmatpush.bf16.msrb.mxu3 %v2731_v51  ;;  %v2638_v51 = vld [vmem:[%s2972_s8 + $0x7c] sm:$0xf] }
  0x4c   : > { %1481 = vmatmul.bf16.vlgmr.msrb.gmra.mxu1 %v2004_v20  ;;  %1568 = vmatmul.bf16.vlgmr.msrb.gmra.mxu0 %v2016_v21  ;;  %v2172_v20 = vor.u32 %v2670_v16, %v2171_v15  ;;  %v2076_v21 = vor.u32 %v2645_v18, %v2075_v17  ;;  %v2628_v17 = vld [vmem:[%s2972_s8 + $0x2c] sm:$0xf]  ;;  %v2041_v18 = vld [vmem:[%s2972_s8 + $0x5c] sm:$0xf0] }
  0x4d   : > { %1589 = vmatpush.bf16.msra.mxu1 %v2722_v10  ;;  %1676 = vmatpush.bf16.msra.mxu0 %v2746_v13  ;;  %v2753_v10 = vld [vmem:[%s3423_s1 + $0x270] sm:$0xff]  ;;  %v2662_v13 = vld [vmem:[%s2972_s8 + $0x13c] sm:$0xf] }
  0x4e   : > { %1549 = vmatmul.bf16.gmra.mxu3 %v2116_v28  ;;  %1734 = vmatpush.bf16.msra.mxu2 %v2762_v50  ;;  %v2778_v28 = vld [vmem:[%s3423_s1 + $0x338] sm:$0xff]  ;;  %v2749_v50 = vld [vmem:[%s3423_s1 + $0x250] sm:$0xff] }
  0x4f   : > { %1520 = vmatmul.bf16.gmra.mxu2 %v2112_v22  ;;  %1763 = vmatpush.bf16.msra.mxu3 %v2770_v56  ;;  %v2639_v22 = vld [vmem:[%s2972_s8 + $0x84] sm:$0xf] }
  0x50   : > { %v2080_v24 = vor.u32 %v2639_v22, %v2077_v23  ;;  %v2671_v56 = vld [vmem:[%s2972_s8 + $0x180] sm:$0xf0] }
  0x51   : > { %1590 = vmatpush.bf16.msra.mxu1 %v2721_v19  ;;  %1677 = vmatpush.bf16.msra.mxu0 %v2745_v25  ;;  %v2160_v19 = vor.u32 %v2662_v13, %v2157_v14  ;;  %v2752_v25 = vld [vmem:[%s3423_s1 + $0x268] sm:$0xff] }
  0x52   : > { %1735 = vmatpush.bf16.msra.mxu2 %v2761_v54  ;;  %v2646_v54 = vld [vmem:[%s2972_s8 + $0xb8] sm:$0xf0] }
  0x53   : > { %1764 = vmatpush.bf16.msra.mxu3 %v2769_v9  ;;  %v2659_v9 = vld [vmem:[%s2972_s8 + $0x120] sm:$0xf0] }
  0x55   : > { %1591 = vmatpush.bf16.msra.mxu1 %v2720_v26  ;;  %1678 = vmatpush.bf16.msra.mxu0 %v2744_v31  ;;  %v2758_v26 = vld [vmem:[%s3423_s1 + $0x298] sm:$0xff]  ;;  %v2625_v31 = vld [vmem:[%s2972_s8 + $0x14] sm:$0xf] }
  0x56   : > { %1736 = vmatpush.bf16.msra.mxu2 %v2760_v7  ;;  %v2121_v7 = vld [vmem:[%s2972_s8 + $0x114] sm:$0xf0] }
  0x57   : > { %1765 = vmatpush.bf16.msra.mxu3 %v2768_v12 }
  0x59   : > { %1592 = vmatpush.bf16.msra.mxu1 %v2719_v32  ;;  %1679 = vmatpush.bf16.msra.mxu0 %v2743_v34  ;;  %v2017_v32 = vld [vmem:[%s2972_s8 + $0x44] sm:$0xf0]  ;;  %v2633_v34 = vld [vmem:[%s2972_s8 + $0x50] sm:$0xf0] }
  0x5a   : > { %1737 = vmatpush.bf16.msra.mxu2 %v2759_v11  ;;  %v2020_v37 = vor.u32 %v2625_v31, %v2017_v32  ;;  %v2032_v38 = vor.u32 %v2633_v34, %v2031_v33  ;;  %v2634_v11 = vld [vmem:[%s2972_s8 + $0x58] sm:$0xf0]  ;;  %v2647_v31 = vld [vmem:[%s2972_s8 + $0xc0] sm:$0xf0] }
  0x5b   : > { %1766 = vmatpush.bf16.msra.mxu3 %v2767_v27  ;;  %v2173_v27 = vld [vmem:[%s2972_s8 + $0x17c] sm:$0xf0] }
  0x5c   : > { %1486 = vmatmul.bf16.gmra.mxu1 %v2056_v43  ;;  %1573 = vmatmul.bf16.gmra.mxu0 %v2068_v44  ;;  %v2777_v43 = vld [vmem:[%s3423_s1 + $0x330] sm:$0xff]  ;;  %v2756_v44 = vld [vmem:[%s3423_s1 + $0x288] sm:$0xff] }
  0x5d   : > { %1593 = vmatpush.bf16.msra.mxu1 %v2718_v35  ;;  %1680 = vmatpush.bf16.msra.mxu0 %v2742_v52  ;;  %v2127_v35 = vld [vmem:[%s2972_s8 + $0xe8] sm:$0xf]  ;;  %v2069_v52 = vld [vmem:[%s2972_s8 + $0xac] sm:$0xf0] }
  0x5e   : > { %1554 = vmatmul.bf16.gmra.mxu3 %v2168_v48  ;;  %1738 = vmatpush.bf16.msra.mxu2 %v2758_v26  ;;  %v2128_v40 = vor.u32 %v2658_v36, %v2127_v35  ;;  %v2765_v48 = vld [vmem:[%s3423_s1 + $0x2d0] sm:$0xff]  ;;  %v2072_v57 = vor.u32 %v2638_v51, %v2069_v52  ;;  %v2664_v26 = vld [vmem:[%s2972_s8 + $0x14c] sm:$0xf] }
  0x5f   : > { %1525 = vmatmul.bf16.gmra.mxu2 %v2164_v45  ;;  %v2132_v45 = vor.u32 %v2652_v39, %v2129_v41  ;;  %v2176_v32 = vor.u32 %v2664_v26, %v2173_v27  ;;  %v2093_v39 = vld [vmem:[%s2972_s8 + $0xc4] sm:$0xf0]  ;;  %v2660_v51 = vld [vmem:[%s2972_s8 + $0x128] sm:$0xf0] }
  0x61   : > { %1594 = vmatpush.bf16.msra.mxu1 %v2717_v42  ;;  %1681 = vmatpush.bf16.msra.mxu0 %v2741_v55  ;;  %v2766_v42 = vld [vmem:[%s3423_s1 + $0x2d8] sm:$0xff]  ;;  %v2179_v55 = vld [vmem:[%s2972_s8 + $0x150] sm:$0xf] }
  0x62   : > { %1739 = vmatpush.bf16.msra.mxu2 %v2757_v30  ;;  %1767 = vmatpush.bf16.msra.mxu3 %v2766_v42  ;;  %v2180_v60 = vor.u32 %v2671_v56, %v2179_v55  ;;  %v2091_v30 = vld [vmem:[%s2972_s8 + $0x90] sm:$0xf] }
  0x65   : > { %1595 = vmatpush.bf16.msra.mxu1 %v2716_v49  ;;  %1682 = vmatpush.bf16.msra.mxu0 %v2740_v58  ;;  %v2776_v49 = vld [vmem:[%s3423_s1 + $0x328] sm:$0xff] }
  0x66   : > { %1740 = vmatpush.bf16.msra.mxu2 %v2756_v44  ;;  %1768 = vmatpush.bf16.msra.mxu3 %v2765_v48  ;;  %v2047_v48 = vld [vmem:[%s2972_s8 + $0x30] sm:$0xf] }
  0x69   : > { %1596 = vmatpush.bf16.msra.mxu1 %v2715_v53  ;;  %1683 = vmatpush.bf16.msra.mxu0 %v2739_v8  ;;  %v2083_v53 = vld [vmem:[%s2972_s8 + $0x88] sm:$0xf]  ;;  %v2135_v8 = vld [vmem:[%s2972_s8 + $0xf0] sm:$0xf] }
  0x6a   : > { %1741 = vmatpush.bf16.msra.mxu2 %v2755_v47  ;;  %v2084_v58 = vor.u32 %v2646_v54, %v2083_v53  ;;  %1769 = vmatpush.bf16.msra.mxu3 %v2764_v62  ;;  %v2136_v13 = vor.u32 %v2659_v9, %v2135_v8  ;;  %v2033_v47 = vld [vmem:[%s2972_s8 + $0x54] sm:$0xf0]  ;;  %v2640_v8 = vld [vmem:[%s2972_s8 + $0x8c] sm:$0xf]  ;;  %v2085_v9 = vld [vmem:[%s2972_s8 + $0xbc] sm:$0xf0] }
  0x6c   : > { %1491 = vmatmul.bf16.gmra.mxu1 %v2108_v0  ;;  %1578 = vmatmul.bf16.gmra.mxu0 %v2120_v1  ;;  %v2184_v0 = vor.u32 %v2665_v59, %v2181_v61  ;;  %v2748_v1 = vld [vmem:[%s3423_s1 + $0x248] sm:$0xff]  ;;  %v2145_v59 = vld [vmem:[%s2972_s8 + $0x12c] sm:$0xf0] }
  0x6d   : > { %1705 = vmatpush.bf16.msrb.mxu1 %v2754_v6  ;;  %1792 = vmatpush.bf16.msrb.mxu0 %v2778_v28  ;;  %v2651_v6 = vld [vmem:[%s2972_s8 + $0xe4] sm:$0xf] }
  0x6e   : > { %1655 = vmatmul.bf16.vlgmr.msrb.gmra.mxu3 %v2028_v5  ;;  %v2773_v5 = vld [vmem:[%s3423_s1 + $0x310] sm:$0xff]  ;;  %v2124_v12 = vor.u32 %v2651_v6, %v2121_v7 }
  0x6f   : > { %1626 = vmatmul.bf16.vlgmr.msrb.gmra.mxu2 %v2024_v2  ;;  %v2763_v2 = vld [vmem:[%s3423_s1 + $0x2c0] sm:$0xff] }
  0x70   : > { %2810 = vmatpush.bf16.msrb.mxu2 %v2778_v28  ;;  %1770 = vmatpush.bf16.msra.mxu3 %v2763_v2  ;;  %v2187_v28 = vld [vmem:[%s2972_s8 + $0x158] sm:$0xf] }
  0x71   : > { %1706 = vmatpush.bf16.msrb.mxu1 %v2753_v10  ;;  %1793 = vmatpush.bf16.msrb.mxu0 %v2777_v43  ;;  %v2039_v10 = vld [vmem:[%s2972_s8 + $0x28] sm:$0xf] }
  0x72   : > { %v2040_v16 = vor.u32 %v2634_v11, %v2039_v10  ;;  %v2099_v10 = vld [vmem:[%s2972_s8 + $0x98] sm:$0xf]  ;;  %v2648_v11 = vld [vmem:[%s2972_s8 + $0xc8] sm:$0xf0] }
  0x74   : > { %2811 = vmatpush.bf16.msrb.mxu2 %v2777_v43 }
  0x75   : > { %1707 = vmatpush.bf16.msrb.mxu1 %v2752_v25  ;;  %1794 = vmatpush.bf16.msrb.mxu0 %v2776_v49 }
  0x78   : > { %2812 = vmatpush.bf16.msrb.mxu2 %v2776_v49  ;;  %v2635_v49 = vld [vmem:[%s2972_s8 + $0x60] sm:$0xf0] }
  0x79   : > { %1708 = vmatpush.bf16.msrb.mxu1 %v2751_v29  ;;  %1795 = vmatpush.bf16.msrb.mxu0 %v2775_v63  ;;  %v2672_v29 = vld [vmem:[%s2972_s8 + $0x188] sm:$0xf0]  ;;  %v2048_v54 = vor.u32 %v2635_v49, %v2047_v48  ;;  %v2674_v48 = vld [vmem:[%s2972_s8 + $0x198] sm:$0xf0] }
  0x7a   : > { %v2188_v34 = vor.u32 %v2672_v29, %v2187_v28 }
  0x7c   : > { %1496 = vmatmul.bf16.gmra.mxu1 %v2160_v19  ;;  %1583 = vmatmul.bf16.gmra.mxu0 %v2172_v20  ;;  %v2772_v19 = vld [vmem:[%s3423_s1 + $0x308] sm:$0xff]  ;;  %v2044_v20 = vor.u32 %v2628_v17, %v2041_v18  ;;  %v2088_v17 = vor.u32 %v2640_v8, %v2085_v9 }
  0x7d   : > { %1709 = vmatpush.bf16.msrb.mxu1 %v2750_v46  ;;  %2813 = vmatpush.bf16.msrb.mxu2 %v2775_v63  ;;  %v2627_v46 = vld [vmem:[%s2972_s8 + $0x24] sm:$0xf] }
  0x7e   : > { %1660 = vmatmul.bf16.gmra.mxu3 %v2080_v24  ;;  %1796 = vmatpush.bf16.msrb.mxu0 %v2774_v3  ;;  %v2036_v52 = vor.u32 %v2627_v46, %v2033_v47  ;;  %v2203_v47 = vld [vmem:[%s2972_s8 + $0x168] sm:$0xf] }
  0x7f   : > { %1631 = vmatmul.bf16.gmra.mxu2 %v2076_v21  ;;  %v2771_v21 = vld [vmem:[%s3423_s1 + $0x300] sm:$0xff] }
  0x81   : > { %1710 = vmatpush.bf16.msrb.mxu1 %v2749_v50  ;;  %2814 = vmatpush.bf16.msrb.mxu2 %v2774_v3  ;;  %v2143_v50 = vld [vmem:[%s2972_s8 + $0xf8] sm:$0xf] }
  0x82   : > { %1797 = vmatpush.bf16.msrb.mxu0 %v2773_v5 }
  0x85   : > { %1711 = vmatpush.bf16.msrb.mxu1 %v2748_v1  ;;  %2815 = vmatpush.bf16.msrb.mxu2 %v2773_v5 }
  0x86   : > { %1798 = vmatpush.bf16.msrb.mxu0 %v2772_v19 }
  0x89   : > { %1712 = vmatpush.bf16.msrb.mxu1 %v2747_v4  ;;  %2816 = vmatpush.bf16.msrb.mxu2 %v2772_v19  ;;  %v2100_v19 = vor.u32 %v2648_v11, %v2099_v10 }
  0x8a   : > { %1799 = vmatpush.bf16.msrb.mxu0 %v2771_v21 }
  0x8c   : > { %1597 = vmatmul.bf16.vlgmr.msra.gmra.mxu1 %v2020_v37  ;;  %1684 = vmatmul.bf16.vlgmr.msra.gmra.mxu0 %v2032_v38  ;;  %v2092_v37 = vor.u32 %v2647_v31, %v2091_v30  ;;  %v2641_v38 = vld [vmem:[%s2972_s8 + $0x94] sm:$0xf] }
  0x8d   : > { %2817 = vmatpush.bf16.msrb.mxu2 %v2771_v21  ;;  %v2096_v41 = vor.u32 %v2641_v38, %v2093_v39  ;;  %v2653_v39 = vld [vmem:[%s2972_s8 + $0xf4] sm:$0xf] }
  0x8e   : > { %1665 = vmatmul.bf16.gmra.mxu3 %v2132_v45 }
  0x8f   : > { %1636 = vmatmul.bf16.gmra.mxu2 %v2128_v40 }
  0x9c   : > { %1602 = vmatmul.bf16.gmra.mxu1 %v2072_v57  ;;  %1689 = vmatmul.bf16.gmra.mxu0 %v2084_v58  ;;  %v2144_v57 = vor.u32 %v2660_v51, %v2143_v50  ;;  %v2654_v58 = vld [vmem:[%s2972_s8 + $0xfc] sm:$0xf] }
  0x9d   : > { %v2148_v63 = vor.u32 %v2654_v58, %v2145_v59 }
  0x9e   : > { %1670 = vmatmul.bf16.gmra.mxu3 %v2184_v0 }
  0x9f   : > { %1641 = vmatmul.bf16.gmra.mxu2 %v2180_v60 }
  0xa9   : > { %v3293_v14 = vpop.f32.mrf.mxu1  ;;  %v1453_v15 = vpop.f32.mrf.mxu0 }
  0xac   : > { %1607 = vmatmul.bf16.gmra.mxu1 %v2124_v12  ;;  %1694 = vmatmul.bf16.gmra.mxu0 %v2136_v13  ;;  %v2195_v13 = vld [vmem:[%s2972_s8 + $0x160] sm:$0xf] }
  0xae   : > { %1771 = vmatmul.bf16.vlgmr.msra.gmra.mxu3 %v2044_v20 }
  0xaf   : > { %1742 = vmatmul.bf16.vlgmr.msra.gmra.mxu2 %v2040_v16 }
  0xb1   : > { %v3303_v23 = vpop.f32.mrf.mxu1  ;;  %v1455_v24 = vpop.f32.mrf.mxu0 }
  0xb2   : > { %v1511_v22 = vpop.f32.mrf.mxu2  ;;  %v1540_v25 = vpop.f32.mrf.mxu3 }
  0xb9   : > { %v3311_v35 = vpop.f32.mrf.mxu1  ;;  %v1458_v36 = vpop.f32.mrf.mxu0 }
  0xba   : > { %v1513_v33 = vpop.f32.mrf.mxu2  ;;  %v1542_v40 = vpop.f32.mrf.mxu3 }
  0xbc   : > { %1612 = vmatmul.bf16.gmra.mxu1 %v2176_v32  ;;  %1699 = vmatmul.bf16.gmra.mxu0 %v2188_v34 }
  0xbe   : > { %1776 = vmatmul.bf16.gmra.mxu3 %v2096_v41  ;;  %v2151_v41 = vld [vmem:[%s2972_s8 + $0x100] sm:$0xf] }
  0xbf   : > { %1747 = vmatmul.bf16.gmra.mxu2 %v2092_v37 }
  0xc1   : > { %v3315_v43 = vpop.f32.mrf.mxu1  ;;  %v1460_v44 = vpop.f32.mrf.mxu0 }
  0xc2   : > { %v1516_v42 = vpop.f32.mrf.mxu2  ;;  %v1545_v45 = vpop.f32.mrf.mxu3 }
  0xc9   : > { %v1482_v55 = vpop.f32.mrf.mxu1  ;;  %v1569_v56 = vpop.f32.mrf.mxu0 }
  0xca   : > { %v1518_v53 = vpop.f32.mrf.mxu2  ;;  %v1483_v60 = vadd.f32 %v1482_v55, %v1453_v15  ;;  %v1547_v61 = vpop.f32.mrf.mxu3  ;;  %v2673_v15 = vld [vmem:[%s2972_s8 + $0x190] sm:$0xf0]  ;;  %v2204_v55 = vor.u32 %v2674_v48, %v2203_v47 }
  0xcc   : > { %v1512_v62 = vadd.f32 %v1511_v22, %v1483_v60  ;;  %1713 = vmatmul.bf16.vlgmr.msrb.gmra.mxu1 %v2036_v52  ;;  %1800 = vmatmul.bf16.vlgmr.msrb.gmra.mxu0 %v2048_v54  ;;  %v2196_v22 = vor.u32 %v2673_v15, %v2195_v13 }
  0xce   : > { %v1541_v0 = vadd.f32 %v1540_v25, %v1512_v62  ;;  %1781 = vmatmul.bf16.gmra.mxu3 %v2148_v63  ;;  %v2197_v25 = vld [vmem:[%s2972_s8 + $0x194] sm:$0xf0] }
  0xcf   : > { %1752 = vmatmul.bf16.gmra.mxu2 %v2144_v57 }
  0xd0   : > { %v3325_v1 = vadd.f32 %v1569_v56, %v1541_v0 }
  0xd1   : > { %v1484_v3 = vpop.f32.mrf.mxu1  ;;  %v1571_v4 = vpop.f32.mrf.mxu0 }
  0xd2   : > { %v1521_v2 = vpop.f32.mrf.mxu2  ;;  %v1485_v5 = vadd.f32 %v1484_v3, %v1455_v24  ;;  %v1550_v6 = vpop.f32.mrf.mxu3  ;;  %v2667_v24 = vld [vmem:[%s2972_s8 + $0x164] sm:$0xf]  ;;  %v2666_v3 = vld [vmem:[%s2972_s8 + $0x15c] sm:$0xf] }
  0xd3   : > { %v2200_v29 = vor.u32 %v2667_v24, %v2197_v25 }
  0xd4   : > { %v1514_v7 = vadd.f32 %v1513_v33, %v1485_v5 }
  0xd6   : > { %v1543_v12 = vadd.f32 %v1542_v40, %v1514_v7  ;;  %v2137_v40 = vld [vmem:[%s2972_s8 + $0x124] sm:$0xf0] }
  0xd7   : > { %v2140_v50 = vor.u32 %v2653_v39, %v2137_v40 }
  0xd8   : > { %v3333_v16 = vadd.f32 %v1571_v4, %v1543_v12  ;;  %v2189_v4 = vld [vmem:[%s2972_s8 + $0x18c] sm:$0xf0] }
  0xd9   : > { %v1487_v20 = vpop.f32.mrf.mxu1  ;;  %v1574_v21 = vpop.f32.mrf.mxu0  ;;  %v2192_v8 = vor.u32 %v2666_v3, %v2189_v4 }
  0xda   : > { %v1523_v18 = vpop.f32.mrf.mxu2  ;;  %v1488_v26 = vadd.f32 %v1487_v20, %v1458_v36  ;;  %v1552_v27 = vpop.f32.mrf.mxu3 }
  0xdc   : > { %v1517_v28 = vadd.f32 %v1516_v42, %v1488_v26  ;;  %1718 = vmatmul.bf16.gmra.mxu1 %v2088_v17  ;;  %1805 = vmatmul.bf16.gmra.mxu0 %v2100_v19  ;;  %v2661_v42 = vld [vmem:[%s2972_s8 + $0x130] sm:$0xf0] }
  0xdd   : > { %v2152_v51 = vor.u32 %v2661_v42, %v2151_v41 }
  0xde   : > { %v1546_v30 = vadd.f32 %v1545_v45, %v1517_v28  ;;  %1786 = vmatmul.bf16.gmra.mxu3 %v2200_v29 }
  0xdf   : > { %1757 = vmatmul.bf16.gmra.mxu2 %v2196_v22 }
  0xe0   : > { %v3337_v31 = vadd.f32 %v1574_v21, %v1546_v30 }
  0xe1   : > { %v1489_v33 = vpop.f32.mrf.mxu1  ;;  %v1576_v34 = vpop.f32.mrf.mxu0 }
  0xe2   : > { %v1526_v32 = vpop.f32.mrf.mxu2  ;;  %v1490_v36 = vadd.f32 %v1489_v33, %v1460_v44  ;;  %v1555_v37 = vpop.f32.mrf.mxu3 }
  0xe4   : > { %v1519_v38 = vadd.f32 %v1518_v53, %v1490_v36 }
  0xe6   : > { %v1548_v46 = vadd.f32 %v1547_v61, %v1519_v38 }
  0xe8   : > { %v3345_v49 = vadd.f32 %v1576_v34, %v1548_v46 }
  0xe9   : > { %v1492_v52 = vpop.f32.mrf.mxu1  ;;  %v1579_v54 = vpop.f32.mrf.mxu0 }
  0xea   : > { %v1528_v45 = vpop.f32.mrf.mxu2  ;;  %v1493_v44 = vadd.f32 %v1492_v52, %v3293_v14  ;;  %v1557_v53 = vpop.f32.mrf.mxu3 }
  0xec   : > { %v1522_v56 = vadd.f32 %v1521_v2, %v1493_v44  ;;  %1723 = vmatmul.bf16.gmra.mxu1 %v2140_v50  ;;  %1810 = vmatmul.bf16.gmra.mxu0 %v2152_v51 }
  0xee   : > { %v1551_v57 = vadd.f32 %v1550_v6, %v1522_v56 }
  0xef   : > { %1815 = vmatmul.bf16.vlgmr.msrb.gmra.mxu2 %v2204_v55 }
  0xf0   : > { %v1580_v58 = vadd.f32 %v1579_v54, %v1551_v57 }
  0xf1   : > { %v1494_v60 = vpop.f32.mrf.mxu1  ;;  %v1581_v61 = vpop.f32.mrf.mxu0 }
  0xf2   : > { %v1627_v59 = vpop.f32.mrf.mxu2  ;;  %v1495_v62 = vadd.f32 %v1494_v60, %v3303_v23  ;;  %v1656_v63 = vpop.f32.mrf.mxu3 }
  0xf4   : > { %v1524_v0 = vadd.f32 %v1523_v18, %v1495_v62 }
  0xf6   : > { %v1553_v5 = vadd.f32 %v1552_v27, %v1524_v0 }
  0xf8   : > { %v1582_v7 = vadd.f32 %v1581_v61, %v1553_v5 }
  0xf9   : > { %v1497_v9 = vpop.f32.mrf.mxu1  ;;  %v1584_v2 = vpop.f32.mrf.mxu0 }
  0xfa   : > { %v1629_v14 = vpop.f32.mrf.mxu2  ;;  %v1498_v10 = vadd.f32 %v1497_v9, %v3311_v35  ;;  %v3352_v11 = vpop.f32.mrf.mxu3 }
  0xfc   : > { %v1527_v6 = vadd.f32 %v1526_v32, %v1498_v10  ;;  %1728 = vmatmul.bf16.gmra.mxu1 %v2192_v8 }
  0xfe   : > { %v1556_v12 = vadd.f32 %v1555_v37, %v1527_v6 }
 0x100   : > { %v1585_v13 = vadd.f32 %v1584_v2, %v1556_v12 }
 0x101   : > { %v1499_v23 = vpop.f32.mrf.mxu1  ;;  %v1586_v17 = vpop.f32.mrf.mxu0 }
 0x102   : > { %v1632_v15 = vpop.f32.mrf.mxu2  ;;  %v1500_v18 = vadd.f32 %v1499_v23, %v3315_v43  ;;  %v1661_v19 = vpop.f32.mrf.mxu3 }
 0x104   : > { %v1529_v20 = vadd.f32 %v1528_v45, %v1500_v18 }
 0x106   : > { %v1558_v21 = vadd.f32 %v1557_v53, %v1529_v20 }
 0x108   : > { %v1587_v22 = vadd.f32 %v1586_v17, %v1558_v21 }
 0x109   : > { %v1598_v25 = vpop.f32.mrf.mxu1  ;;  %v1685_v26 = vpop.f32.mrf.mxu0 }
 0x10a   : > { %v1634_v24 = vpop.f32.mrf.mxu2  ;;  %v1599_v35 = vadd.f32 %v1598_v25, %v3325_v1  ;;  %v3356_v28 = vpop.f32.mrf.mxu3 }
 0x10c   : > { %v1628_v27 = vadd.f32 %v1627_v59, %v1599_v35 }
 0x10e   : > { %v1657_v29 = vadd.f32 %v1656_v63, %v1628_v27 }
 0x110   : > { %v1686_v30 = vadd.f32 %v1685_v26, %v1657_v29 }
 0x111   : > { %v1600_v33 = vpop.f32.mrf.mxu1  ;;  %v1687_v34 = vpop.f32.mrf.mxu0 }
 0x112   : > { %v1637_v32 = vpop.f32.mrf.mxu2  ;;  %v1601_v36 = vadd.f32 %v1600_v33, %v3333_v16  ;;  %v1666_v37 = vpop.f32.mrf.mxu3 }
 0x114   : > { %v1630_v43 = vadd.f32 %v1629_v14, %v1601_v36 }
 0x116   : > { %v1659_v20 = vadd.f32 %v3352_v11, %v1630_v43 }
 0x118   : > { %v1688_v21 = vadd.f32 %v1687_v34, %v1659_v20 }
 0x119   : > { %v1603_v39 = vpop.f32.mrf.mxu1  ;;  %v1690_v40 = vpop.f32.mrf.mxu0 }
 0x11a   : > { %v1639_v38 = vpop.f32.mrf.mxu2  ;;  %v1604_v41 = vadd.f32 %v1603_v39, %v3337_v31  ;;  %v3360_v48 = vpop.f32.mrf.mxu3 }
 0x11c   : > { %v1633_v42 = vadd.f32 %v1632_v15, %v1604_v41 }
 0x11e   : > { %v1662_v46 = vadd.f32 %v1661_v19, %v1633_v42 }
 0x120   : > { %v1691_v1 = vadd.f32 %v1690_v40, %v1662_v46 }
 0x121   : > { %v1605_v50 = vpop.f32.mrf.mxu1  ;;  %v3362_v45 = vpop.f32.mrf.mxu0 }
 0x122   : > { %v1642_v47 = vpop.f32.mrf.mxu2  ;;  %v1606_v51 = vadd.f32 %v1605_v50, %v3345_v49  ;;  %v1671_v53 = vpop.f32.mrf.mxu3 }
 0x124   : > { %v1635_v52 = vadd.f32 %v1634_v24, %v1606_v51 }
 0x126   : > { %v1664_v39 = vadd.f32 %v3356_v28, %v1635_v52 }
 0x128   : > { %v1693_v51 = vadd.f32 %v3362_v45, %v1664_v39 }
 0x129   : > { %v1608_v54 = vpop.f32.mrf.mxu1  ;;  %v1695_v55 = vpop.f32.mrf.mxu0 }
 0x12a   : > { %v1644_v16 = vpop.f32.mrf.mxu2  ;;  %v1609_v44 = vadd.f32 %v1608_v54, %v1580_v58  ;;  %v3371_v0 = vpop.f32.mrf.mxu3 }
 0x12c   : > { %v1638_v56 = vadd.f32 %v1637_v32, %v1609_v44 }
 0x12e   : > { %v1667_v57 = vadd.f32 %v1666_v37, %v1638_v56 }
 0x130   : > { %v3365_v31 = vadd.f32 %v1695_v55, %v1667_v57 }
 0x131   : > { %v1610_v60 = vpop.f32.mrf.mxu1  ;;  %v3367_v61 = vpop.f32.mrf.mxu0 }
 0x132   : > { %v1743_v59 = vpop.f32.mrf.mxu2  ;;  %v1611_v62 = vadd.f32 %v1610_v60, %v1582_v7  ;;  %v1772_v14 = vpop.f32.mrf.mxu3 }
 0x134   : > { %v3369_v63 = vadd.f32 %v1639_v38, %v1611_v62 }
 0x139   : > { %v1613_v3 = vpop.f32.mrf.mxu1  ;;  %v1700_v4 = vpop.f32.mrf.mxu0 }
 0x13a   : > { %v1745_v49 = vpop.f32.mrf.mxu2  ;;  %v1614_v5 = vadd.f32 %v1613_v3, %v1585_v13  ;;  %v1774_v7 = vpop.f32.mrf.mxu3  ;;  %v1669_v3 = vadd.f32 %v3360_v48, %v3369_v63 }
 0x13c   : > { %v1643_v8 = vadd.f32 %v1642_v47, %v1614_v5 }
 0x13e   : > { %v1672_v58 = vadd.f32 %v1671_v53, %v1643_v8 }
 0x140   : > { %v3373_v9 = vadd.f32 %v1700_v4, %v1672_v58 }
 0x141   : > { %v1615_v10 = vpop.f32.mrf.mxu1  ;;  %v3375_v6 = vpop.f32.mrf.mxu0 }
 0x142   : > { %v1748_v2 = vpop.f32.mrf.mxu2  ;;  %v1616_v12 = vadd.f32 %v1615_v10, %v1587_v22  ;;  %v1777_v27 = vpop.f32.mrf.mxu3  ;;  %v3383_v22 = vld [vmem:[%s3424_s2] ss:$0 sm:$0xff] }
 0x144   : > { %v3377_v15 = vadd.f32 %v1644_v16, %v1616_v12 }
 0x149   : > { %v1714_v23 = vpop.f32.mrf.mxu1  ;;  %v1801_v17 = vpop.f32.mrf.mxu0 }
 0x14a   : > { %v1715_v18 = vadd.f32 %v1714_v23, %v1686_v30  ;;  %v1750_v19 = vpop.f32.mrf.mxu2  ;;  %v1779_v46 = vpop.f32.mrf.mxu3 }
 0x14c   : > { %v1744_v13 = vadd.f32 %v1743_v59, %v1715_v18 }
 0x14e   : > { %v1773_v24 = vadd.f32 %v1772_v14, %v1744_v13  ;;  %v1698_v14 = vadd.f32 %v3367_v61, %v1669_v3 }
 0x150   : > { %v1802_v29 = vadd.f32 %v1801_v17, %v1773_v24  ;;  %v1674_v24 = vadd.f32 %v3371_v0, %v3377_v15 }
 0x151   : > { %v1716_v25 = vpop.f32.mrf.mxu1  ;;  %v1803_v26 = vpop.f32.mrf.mxu0 }
 0x152   : > { %v1717_v35 = vadd.f32 %v1716_v25, %v1688_v21  ;;  %v1753_v33 = vpop.f32.mrf.mxu2  ;;  %v1821_v36 = vadd.f32 %v3383_v22, %v1802_v29  ;;  %v1782_v53 = vpop.f32.mrf.mxu3 }
 0x154   : > { %v1746_v32 = vadd.f32 %v1745_v49, %v1717_v35  ;;  %v1848_v40 = vmax.f32 %v1821_v36, 0.0 }
 0x156   : > { %v1775_v30 = vadd.f32 %v1774_v7, %v1746_v32  ;;  %v1703_v32 = vadd.f32 %v3375_v6, %v1674_v24 }
 0x158   : > { %v1804_v11 = vadd.f32 %v1803_v26, %v1775_v30 }
 0x159   : > { %v1719_v43 = vpop.f32.mrf.mxu1  ;;  %v1806_v37 = vpop.f32.mrf.mxu0 }
 0x15a   : > { %v1822_v34 = vadd.f32 %v3383_v22, %v1804_v11  ;;  %v1720_v38 = vadd.f32 %v1719_v43, %v1691_v1  ;;  %v1755_v50 = vpop.f32.mrf.mxu2  ;;  %v1784_v10 = vpop.f32.mrf.mxu3 }
 0x15c   : > { %v1849_v41 = vmax.f32 %v1822_v34, 0.0  ;;  %v1749_v42 = vadd.f32 %v1748_v2, %v1720_v38 }
 0x15e   : > { %v2782_v47 = vpack.c.bf16 %v1849_v41, %v1848_v40  ;;  %v1778_v16 = vadd.f32 %v1777_v27, %v1749_v42 }
 0x160   : > { %2783 = vst [vmem:[%s3392_s6] sm:$0xff] %v2782_v47   ;;  %v1807_v28 = vadd.f32 %v1806_v37, %v1778_v16 }
 0x161   : > { %v1721_v54 = vpop.f32.mrf.mxu1  ;;  %v1808_v1 = vpop.f32.mrf.mxu0 }
 0x162   : > { %v1722_v55 = vadd.f32 %v1721_v54, %v1693_v51  ;;  %v1823_v56 = vadd.f32 %v3383_v22, %v1807_v28  ;;  %v1758_v59 = vpop.f32.mrf.mxu2  ;;  %v1787_v61 = vpop.f32.mrf.mxu3 }
 0x164   : > { %v1751_v52 = vadd.f32 %v1750_v19, %v1722_v55  ;;  %v1850_v4 = vmax.f32 %v1823_v56, 0.0 }
 0x166   : > { %v1780_v44 = vadd.f32 %v1779_v46, %v1751_v52 }
 0x168   : > { %v1809_v57 = vadd.f32 %v1808_v1, %v1780_v44 }
 0x169   : > { %v1724_v60 = vpop.f32.mrf.mxu1  ;;  %v1811_v45 = vpop.f32.mrf.mxu0 }
 0x16a   : > { %v1824_v62 = vadd.f32 %v3383_v22, %v1809_v57  ;;  %v1725_v49 = vadd.f32 %v1724_v60, %v3365_v31  ;;  %v1760_v23 = vpop.f32.mrf.mxu2  ;;  %v1789_v37 = vpop.f32.mrf.mxu3 }
 0x16c   : > { %v1851_v5 = vmax.f32 %v1824_v62, 0.0  ;;  %v1754_v8 = vadd.f32 %v1753_v33, %v1725_v49 }
 0x16e   : > { %v2787_v58 = vpack.c.bf16 %v1851_v5, %v1850_v4  ;;  %v1783_v2 = vadd.f32 %v1782_v53, %v1754_v8 }
 0x170   : > { %2799 = vst [vmem:[%s3392_s6 + $0x8] sm:$0xff] %v2787_v58   ;;  %v1812_v17 = vadd.f32 %v1811_v45, %v1783_v2 }
 0x171   : > { %v1726_v12 = vpop.f32.mrf.mxu1  ;;  %v1813_v31 = vpop.f32.mrf.mxu0 }
 0x172   : > { %v1727_v7 = vadd.f32 %v1726_v12, %v1698_v14  ;;  %v1825_v20 = vadd.f32 %v3383_v22, %v1812_v17  ;;  %v1816_v27 = vpop.f32.mrf.mxu2 }
 0x174   : > { %v1756_v18 = vadd.f32 %v1755_v50, %v1727_v7  ;;  %v1852_v25 = vmax.f32 %v1825_v20, 0.0 }
 0x176   : > { %v1785_v19 = vadd.f32 %v1784_v10, %v1756_v18 }
 0x178   : > { %v1814_v48 = vadd.f32 %v1813_v31, %v1785_v19 }
 0x179   : > { %v1729_v63 = vpop.f32.mrf.mxu1 }
 0x17a   : > { %v1826_v13 = vadd.f32 %v3383_v22, %v1814_v48  ;;  %v1730_v21 = vadd.f32 %v1729_v63, %v3373_v9  ;;  %v1818_v34 = vpop.f32.mrf.mxu2 }
 0x17c   : > { %v1853_v26 = vmax.f32 %v1826_v13, 0.0  ;;  %v1759_v35 = vadd.f32 %v1758_v59, %v1730_v21 }
 0x17e   : > { %v2792_v29 = vpack.c.bf16 %v1853_v26, %v1852_v25  ;;  %v1788_v33 = vadd.f32 %v1787_v61, %v1759_v35 }
 0x180   : > { %2800 = vst [vmem:[%s3392_s6 + $0x10] sm:$0xff] %v2792_v29   ;;  %v1817_v11 = vadd.f32 %v1816_v27, %v1788_v33 }
 0x181   : > { %v1731_v30 = vpop.f32.mrf.mxu1 }
 0x182   : > { %v1732_v36 = vadd.f32 %v1731_v30, %v1703_v32  ;;  %v1827_v38 = vadd.f32 %v3383_v22, %v1817_v11 }
 0x184   : > { %v1761_v43 = vadd.f32 %v1760_v23, %v1732_v36  ;;  %v1854_v39 = vmax.f32 %v1827_v38, 0.0 }
 0x186   : > { %v1790_v9 = vadd.f32 %v1789_v37, %v1761_v43 }
 0x188   : > { %v1819_v0 = vadd.f32 %v1818_v34, %v1790_v9 }
 0x18a   : > { %v1828_v15 = vadd.f32 %v3383_v22, %v1819_v0 }
 0x18c   : > { %v1855_v40 = vmax.f32 %v1828_v15, 0.0 }
 0x18e   : > { %v2797_v41 = vpack.c.bf16 %v1855_v40, %v1854_v39 }
 0x190   : > { %2801 = vst [vmem:[%s3392_s6 + $0x18] sm:$0xff] %v2797_v41  }
 0x191 PF: > { %s13_s14 = sadd.s32 1, %s2866_s14   ;;  %s3426_s12 = smov %s2862_s13 }
 0x192   : > { %p10_p5 = scmp.ge.s32.totalorder %s13_s14, 4   ;;  %s3427_s13 = smov %s3429_s15 }
 0x194   :  { %12 = sbr.rel (!%p10_p5) target bundleno = 2 (0x2), region = 76 }

// kernel: dblock_fwd.13
= control target key start
LH: loop header
LB: loop body
LE: loop exit
PB: predicated region body
PF: predicated region fallthrough
CT: control target
= control target key end

     0   :  { %s1472_s12 = smov 0   ;;  %s1474_s13 = smov 0   ;;  %s1702_s0 = inlined_call_operand.vmem [shape: bf16[128,640], index: 0, kind: input, shape index: {}]   ;;  %s1703_s1 = inlined_call_operand.vmem [shape: bf16[640,128], index: 1, kind: input, shape index: {}]   ;;  %s1704_s2 = inlined_call_operand.vmem [shape: f32[1,128], index: 2, kind: input, shape index: {}]   ;;  %s1705_s3 = inlined_call_operand.vmem [shape: bf16[128,128], index: 3, kind: output, shape index: {}]  }
   0x1   :  { %s1476_s14 = smov 0  }
   0x2 LB: > { %s32_s15 = sadd.s32 1, %s1446_s13  ;;  %p1056_p0 = scmp.ge.s32.totalorder %s1450_s14, 1  ;;  %s1450_s14 = sphi %s1476_s14, %s13_s14   ;;  %s1446_s13 = sphi %s1474_s13, %s1707_s13   ;;  %s1442_s12 = sphi %s1472_s12, %s1706_s12  }
   0x3   : > { %p34_p1 = scmp.ge.s32.totalorder %s32_s15, 2  ;;  %p191_p2 = scmp.lt.s32.totalorder %s1450_s14, 3 }
   0x5   : > { %s1709_s15 = smov (%p34_p1, %s32_s15), 0  ;;  %p192_p3 = pnand %p1056_p0, %p191_p2 }
   0x6   : > { %s1057_s5 = sshll.u32 (!%p192_p3), %s1442_s12, 3 }
   0x7   : > { %195 = sbr.rel (%p192_p3) target bundleno = 273 (0x111), region = 32  ;;  %p236_p4 = scmp.lt.s32.totalorder (!%p192_p3), %s1057_s5, 15 }
   0xc   : > { %v1330_v0 = vld [vmem:[%s1703_s1 + $0x38] sm:$0xff]  ;;  %v1329_v2 = vld [vmem:[%s1703_s1 + $0x30] sm:$0xff]  ;;  %v1328_v6 = vld [vmem:[%s1703_s1 + $0x28] sm:$0xff]  ;;  %s1711_s5 = smov (!%p236_p4, %s1057_s5), 15 }
   0xd   : > { %v1346_v1 = vld [vmem:[%s1703_s1 + $0xb8] sm:$0xff]  ;;  %1386 = vmatpush.bf16.msra.mxu1 %v1330_v0  ;;  %740 = vmatpush.bf16.msra.mxu0 %v1330_v0  ;;  %v1345_v3 = vld [vmem:[%s1703_s1 + $0xb0] sm:$0xff]  ;;  %v1344_v7 = vld [vmem:[%s1703_s1 + $0xa8] sm:$0xff]  ;;  %s1402_s25 = smul.u32 20, %s1711_s5  ;;  %s1060_s7 = sshll.u32 %s1711_s5, 2 }
   0xe   : > { %798 = vmatpush.bf16.msra.mxu2 %v1346_v1  ;;  %v1354_v4 = vld [vmem:[%s1703_s1 + $0xf8] sm:$0xff]  ;;  %v1353_v5 = vld [vmem:[%s1703_s1 + $0xf0] sm:$0xff]  ;;  %v1352_v8 = vld [vmem:[%s1703_s1 + $0xe8] sm:$0xff]  ;;  %s1678_s11 = scalar_lea.vmem %s1705_s3, %s1060_s7 }
   0xf   : > { %827 = vmatpush.bf16.msra.mxu3 %v1354_v4  ;;  %v1327_v9 = vld [vmem:[%s1703_s1 + $0x20] sm:$0xff]  ;;  %v1326_v12 = vld [vmem:[%s1703_s1 + $0x18] sm:$0xff]  ;;  %v1325_v15 = vld [vmem:[%s1703_s1 + $0x10] sm:$0xff]  ;;  %s1556_s8 = scalar_lea.vmem %s1702_s0, %s1402_s25 }
  0x10   : > { %v1343_v10 = vld [vmem:[%s1703_s1 + $0xa0] sm:$0xff]  ;;  %v1342_v13 = vld [vmem:[%s1703_s1 + $0x98] sm:$0xff]  ;;  %v1341_v16 = vld [vmem:[%s1703_s1 + $0x90] sm:$0xff] }
  0x11   : > { %1387 = vmatpush.bf16.msra.mxu1 %v1329_v2  ;;  %741 = vmatpush.bf16.msra.mxu0 %v1329_v2  ;;  %v1351_v11 = vld [vmem:[%s1703_s1 + $0xe0] sm:$0xff]  ;;  %v1350_v14 = vld [vmem:[%s1703_s1 + $0xd8] sm:$0xff]  ;;  %v1349_v17 = vld [vmem:[%s1703_s1 + $0xd0] sm:$0xff] }
  0x12   : > { %799 = vmatpush.bf16.msra.mxu2 %v1345_v3  ;;  %v1324_v18 = vld [vmem:[%s1703_s1 + $0x8] sm:$0xff]  ;;  %v1323_v20 = vld [vmem:[%s1703_s1] sm:$0xff]  ;;  %v1103_v21 = vld [vmem:[%s1556_s8 + $0x50] sm:$0xf] }
  0x13   : > { %828 = vmatpush.bf16.msra.mxu3 %v1353_v5  ;;  %v1340_v19 = vld [vmem:[%s1703_s1 + $0x88] sm:$0xff]  ;;  %v1338_v22 = vld [vmem:[%s1703_s1 + $0x78] sm:$0xff]  ;;  %v1315_v24 = vld [vmem:[%s1556_s8 + $0x60] sm:$0xf0] }
  0x14   : > { %v1348_v23 = vld [vmem:[%s1703_s1 + $0xc8] sm:$0xff]  ;;  %v1063_v25 = vld [vmem:[%s1556_s8] sm:$0xf]  ;;  %v1305_v26 = vld [vmem:[%s1556_s8 + $0x10] sm:$0xf0]  ;;  %v1104_v31 = vor.u32 %v1315_v24, %v1103_v21 }
  0x15   : > { %1388 = vmatpush.bf16.msra.mxu1 %v1328_v6  ;;  %742 = vmatpush.bf16.msra.mxu0 %v1328_v6  ;;  %v1339_v27 = vld [vmem:[%s1703_s1 + $0x80] sm:$0xff]  ;;  %v1071_v28 = vld [vmem:[%s1556_s8 + $0x8] sm:$0xf]  ;;  %v1306_v29 = vld [vmem:[%s1556_s8 + $0x18] sm:$0xf0]  ;;  %v1064_v32 = vor.u32 %v1305_v26, %v1063_v25 }
  0x16   : > { %800 = vmatpush.bf16.msra.mxu2 %v1344_v7  ;;  %v1362_v30 = vld [vmem:[%s1703_s1 + $0x138] sm:$0xff]  ;;  %v1072_v33 = vor.u32 %v1306_v29, %v1071_v28  ;;  %v1347_v34 = vld [vmem:[%s1703_s1 + $0xc0] sm:$0xff]  ;;  %v1304_v35 = vld [vmem:[%s1556_s8 + $0xc] sm:$0xf] }
  0x17   : > { %829 = vmatpush.bf16.msra.mxu3 %v1352_v8  ;;  %v1073_v36 = vld [vmem:[%s1556_s8 + $0x1c] sm:$0xf0]  ;;  %v1337_v37 = vld [vmem:[%s1703_s1 + $0x70] sm:$0xff]  ;;  %v1336_v40 = vld [vmem:[%s1703_s1 + $0x68] sm:$0xff] }
  0x18   : > { %v1361_v38 = vld [vmem:[%s1703_s1 + $0x130] sm:$0xff]  ;;  %v1076_v39 = vor.u32 %v1304_v35, %v1073_v36  ;;  %v1360_v41 = vld [vmem:[%s1703_s1 + $0x128] sm:$0xff]  ;;  %v1335_v42 = vld [vmem:[%s1703_s1 + $0x60] sm:$0xff] }
  0x19   : > { %1389 = vmatpush.bf16.msra.mxu1 %v1327_v9  ;;  %743 = vmatpush.bf16.msra.mxu0 %v1327_v9  ;;  %v1359_v43 = vld [vmem:[%s1703_s1 + $0x120] sm:$0xff]  ;;  %v1123_v44 = vld [vmem:[%s1556_s8 + $0x78] sm:$0xf]  ;;  %v1320_v45 = vld [vmem:[%s1556_s8 + $0x88] sm:$0xf0] }
  0x1a   : > { %801 = vmatpush.bf16.msra.mxu2 %v1343_v10  ;;  %v1083_v46 = vld [vmem:[%s1556_s8 + $0x28] sm:$0xf]  ;;  %v1310_v47 = vld [vmem:[%s1556_s8 + $0x38] sm:$0xf0]  ;;  %v1091_v49 = vld [vmem:[%s1556_s8 + $0x30] sm:$0xf]  ;;  %v1124_v52 = vor.u32 %v1320_v45, %v1123_v44 }
  0x1b   : > { %830 = vmatpush.bf16.msra.mxu3 %v1351_v11  ;;  %v1334_v48 = vld [vmem:[%s1703_s1 + $0x58] sm:$0xff]  ;;  %v1311_v50 = vld [vmem:[%s1556_s8 + $0x40] sm:$0xf0]  ;;  %v1084_v53 = vor.u32 %v1310_v47, %v1083_v46  ;;  %v1309_v55 = vld [vmem:[%s1556_s8 + $0x34] sm:$0xf] }
  0x1c   : > { %v1358_v51 = vld [vmem:[%s1703_s1 + $0x118] sm:$0xff]  ;;  %v1092_v54 = vor.u32 %v1311_v50, %v1091_v49  ;;  %v1093_v56 = vld [vmem:[%s1556_s8 + $0x44] sm:$0xf0]  ;;  %v1333_v57 = vld [vmem:[%s1703_s1 + $0x50] sm:$0xff] }
  0x1d   : > { %1390 = vmatpush.bf16.msra.mxu1 %v1326_v12  ;;  %744 = vmatpush.bf16.msra.mxu0 %v1326_v12  ;;  %v1357_v58 = vld [vmem:[%s1703_s1 + $0x110] sm:$0xff]  ;;  %v1096_v59 = vor.u32 %v1309_v55, %v1093_v56  ;;  %v1332_v60 = vld [vmem:[%s1703_s1 + $0x48] sm:$0xff]  ;;  %v1331_v62 = vld [vmem:[%s1703_s1 + $0x40] sm:$0xff] }
  0x1e   : > { %802 = vmatpush.bf16.msra.mxu2 %v1342_v13  ;;  %v1356_v61 = vld [vmem:[%s1703_s1 + $0x108] sm:$0xff]  ;;  %v1355_v63 = vld [vmem:[%s1703_s1 + $0x100] sm:$0xff]  ;;  %v1065_v1 = vld [vmem:[%s1556_s8 + $0x14] sm:$0xf0] }
  0x1f   : > { %831 = vmatpush.bf16.msra.mxu3 %v1350_v14  ;;  %v1303_v0 = vld [vmem:[%s1556_s8 + $0x4] sm:$0xf]  ;;  %v1079_v2 = vld [vmem:[%s1556_s8 + $0x10] sm:$0xf]  ;;  %v1111_v4 = vld [vmem:[%s1556_s8 + $0x58] sm:$0xf] }
  0x20   : > { %v1307_v3 = vld [vmem:[%s1556_s8 + $0x20] sm:$0xf0]  ;;  %v1316_v5 = vld [vmem:[%s1556_s8 + $0x68] sm:$0xf0]  ;;  %v1068_v6 = vor.u32 %v1303_v0, %v1065_v1  ;;  %v1314_v9 = vld [vmem:[%s1556_s8 + $0x5c] sm:$0xf] }
  0x21   : > { %1391 = vmatpush.bf16.msra.mxu1 %v1325_v15  ;;  %745 = vmatpush.bf16.msra.mxu0 %v1325_v15  ;;  %v1080_v7 = vor.u32 %v1307_v3, %v1079_v2  ;;  %v1112_v8 = vor.u32 %v1316_v5, %v1111_v4  ;;  %v1113_v10 = vld [vmem:[%s1556_s8 + $0x6c] sm:$0xf0]  ;;  %v1308_v12 = vld [vmem:[%s1556_s8 + $0x2c] sm:$0xf]  ;;  %v1085_v13 = vld [vmem:[%s1556_s8 + $0x3c] sm:$0xf0] }
  0x22   : > { %803 = vmatpush.bf16.msra.mxu2 %v1341_v16  ;;  %v1116_v11 = vor.u32 %v1314_v9, %v1113_v10  ;;  %v1099_v14 = vld [vmem:[%s1556_s8 + $0x38] sm:$0xf]  ;;  %v1312_v15 = vld [vmem:[%s1556_s8 + $0x48] sm:$0xf0]  ;;  %v1131_v16 = vld [vmem:[%s1556_s8 + $0x80] sm:$0xf] }
  0x23   : > { %832 = vmatpush.bf16.msra.mxu3 %v1349_v17  ;;  %v1321_v17 = vld [vmem:[%s1556_s8 + $0x90] sm:$0xf0]  ;;  %v1319_v21 = vld [vmem:[%s1556_s8 + $0x84] sm:$0xf]  ;;  %v1105_v25 = vld [vmem:[%s1556_s8 + $0x64] sm:$0xf0] }
  0x24   : > { %v1313_v24 = vld [vmem:[%s1556_s8 + $0x54] sm:$0xf]  ;;  %v1119_v26 = vld [vmem:[%s1556_s8 + $0x60] sm:$0xf]  ;;  %v1139_v28 = vld [vmem:[%s1556_s8 + $0x88] sm:$0xf] }
  0x25   : > { %1392 = vmatpush.bf16.msra.mxu1 %v1324_v18  ;;  %746 = vmatpush.bf16.msra.mxu0 %v1324_v18  ;;  %v1088_v18 = vor.u32 %v1308_v12, %v1085_v13  ;;  %v1322_v29 = vld [vmem:[%s1556_s8 + $0x98] sm:$0xf0] }
  0x26   : > { %804 = vmatpush.bf16.msra.mxu2 %v1340_v19  ;;  %v1100_v19 = vor.u32 %v1312_v15, %v1099_v14 }
  0x27   : > { %833 = vmatpush.bf16.msra.mxu3 %v1348_v23 }
  0x29   : > { %1393 = vmatpush.bf16.msra.mxu1 %v1323_v20  ;;  %747 = vmatpush.bf16.msra.mxu0 %v1323_v20  ;;  %v1132_v20 = vor.u32 %v1321_v17, %v1131_v16 }
  0x2a   : > { %805 = vmatpush.bf16.msra.mxu2 %v1339_v27  ;;  %v1317_v27 = vld [vmem:[%s1556_s8 + $0x70] sm:$0xf0] }
  0x2b   : > { %834 = vmatpush.bf16.msra.mxu3 %v1347_v34  ;;  %v1125_v34 = vld [vmem:[%s1556_s8 + $0x8c] sm:$0xf0] }
  0x2c   : > { %758 = vmatmul.bf16.vlgmr.msra.gmra.mxu1 %v1104_v31  ;;  %748 = vmatmul.bf16.vlgmr.msra.gmra.mxu0 %v1064_v32  ;;  %v1120_v31 = vor.u32 %v1317_v27, %v1119_v26  ;;  %v1140_v32 = vor.u32 %v1322_v29, %v1139_v28 }
  0x2d   : > { %769 = vmatpush.bf16.msrb.mxu1 %v1338_v22  ;;  %856 = vmatpush.bf16.msrb.mxu0 %v1362_v30  ;;  %v1133_v22 = vld [vmem:[%s1556_s8 + $0x94] sm:$0xf0] }
  0x2e   : > { %1394 = vmatpush.bf16.msrb.mxu2 %v1362_v30  ;;  %835 = vmatmul.bf16.vlgmr.msra.gmra.mxu3 %v1076_v39  ;;  %v1136_v23 = vor.u32 %v1319_v21, %v1133_v22  ;;  %v1108_v30 = vor.u32 %v1313_v24, %v1105_v25 }
  0x2f   : > { %806 = vmatmul.bf16.vlgmr.msra.gmra.mxu2 %v1072_v33  ;;  %v1318_v33 = vld [vmem:[%s1556_s8 + $0x7c] sm:$0xf] }
  0x30   : > { %v1128_v35 = vor.u32 %v1318_v33, %v1125_v34 }
  0x31   : > { %770 = vmatpush.bf16.msrb.mxu1 %v1337_v37  ;;  %857 = vmatpush.bf16.msrb.mxu0 %v1361_v38 }
  0x32   : > { %1395 = vmatpush.bf16.msrb.mxu2 %v1361_v38 }
  0x35   : > { %771 = vmatpush.bf16.msrb.mxu1 %v1336_v40  ;;  %858 = vmatpush.bf16.msrb.mxu0 %v1360_v41 }
  0x36   : > { %1396 = vmatpush.bf16.msrb.mxu2 %v1360_v41 }
  0x39   : > { %772 = vmatpush.bf16.msrb.mxu1 %v1335_v42  ;;  %859 = vmatpush.bf16.msrb.mxu0 %v1359_v43 }
  0x3a   : > { %1397 = vmatpush.bf16.msrb.mxu2 %v1359_v43 }
  0x3c   : > { %763 = vmatmul.bf16.gmra.mxu1 %v1124_v52  ;;  %753 = vmatmul.bf16.gmra.mxu0 %v1084_v53 }
  0x3d   : > { %773 = vmatpush.bf16.msrb.mxu1 %v1334_v48  ;;  %860 = vmatpush.bf16.msrb.mxu0 %v1358_v51 }
  0x3e   : > { %1398 = vmatpush.bf16.msrb.mxu2 %v1358_v51  ;;  %840 = vmatmul.bf16.gmra.mxu3 %v1096_v59  ;;  %v1670_v59 = vld [vmem:[%s1704_s2] ss:$0 sm:$0xff] }
  0x3f   : > { %811 = vmatmul.bf16.gmra.mxu2 %v1092_v54 }
  0x41   : > { %774 = vmatpush.bf16.msrb.mxu1 %v1333_v57  ;;  %861 = vmatpush.bf16.msrb.mxu0 %v1357_v58 }
  0x42   : > { %1399 = vmatpush.bf16.msrb.mxu2 %v1357_v58 }
  0x45   : > { %775 = vmatpush.bf16.msrb.mxu1 %v1332_v60  ;;  %862 = vmatpush.bf16.msrb.mxu0 %v1356_v61 }
  0x46   : > { %1400 = vmatpush.bf16.msrb.mxu2 %v1356_v61 }
  0x49   : > { %776 = vmatpush.bf16.msrb.mxu1 %v1331_v62  ;;  %863 = vmatpush.bf16.msrb.mxu0 %v1355_v63 }
  0x4a   : > { %1401 = vmatpush.bf16.msrb.mxu2 %v1355_v63 }
  0x4c   : > { %777 = vmatmul.bf16.vlgmr.msrb.gmra.mxu1 %v1068_v6  ;;  %864 = vmatmul.bf16.vlgmr.msrb.gmra.mxu0 %v1080_v7 }
  0x4e   : > { %845 = vmatmul.bf16.gmra.mxu3 %v1116_v11 }
  0x4f   : > { %816 = vmatmul.bf16.gmra.mxu2 %v1112_v8 }
  0x5c   : > { %782 = vmatmul.bf16.gmra.mxu1 %v1088_v18  ;;  %869 = vmatmul.bf16.gmra.mxu0 %v1100_v19 }
  0x5e   : > { %850 = vmatmul.bf16.gmra.mxu3 %v1136_v23 }
  0x5f   : > { %821 = vmatmul.bf16.gmra.mxu2 %v1132_v20 }
  0x6c   : > { %787 = vmatmul.bf16.gmra.mxu1 %v1108_v30  ;;  %874 = vmatmul.bf16.gmra.mxu0 %v1120_v31 }
  0x6f   : > { %879 = vmatmul.bf16.vlgmr.msrb.gmra.mxu2 %v1140_v32 }
  0x7c   : > { %792 = vmatmul.bf16.gmra.mxu1 %v1128_v35 }
  0xa9   : > { %v759_v36 = vpop.f32.mrf.mxu1  ;;  %v749_v37 = vpop.f32.mrf.mxu0 }
  0xb1   : > { %v1661_v39 = vpop.f32.mrf.mxu1  ;;  %v751_v40 = vpop.f32.mrf.mxu0 }
  0xb2   : > { %v807_v38 = vpop.f32.mrf.mxu2  ;;  %v836_v44 = vpop.f32.mrf.mxu3 }
  0xb9   : > { %v1663_v42 = vpop.f32.mrf.mxu1  ;;  %v754_v43 = vpop.f32.mrf.mxu0 }
  0xba   : > { %v809_v41 = vpop.f32.mrf.mxu2  ;;  %v838_v48 = vpop.f32.mrf.mxu3 }
  0xc1   : > { %v1665_v46 = vpop.f32.mrf.mxu1  ;;  %v756_v47 = vpop.f32.mrf.mxu0 }
  0xc2   : > { %v812_v45 = vpop.f32.mrf.mxu2  ;;  %v841_v58 = vpop.f32.mrf.mxu3 }
  0xc9   : > { %v778_v49 = vpop.f32.mrf.mxu1  ;;  %v865_v50 = vpop.f32.mrf.mxu0 }
  0xca   : > { %v779_v51 = vadd.f32 %v778_v49, %v749_v37  ;;  %v814_v52 = vpop.f32.mrf.mxu2  ;;  %v843_v9 = vpop.f32.mrf.mxu3 }
  0xcc   : > { %v808_v53 = vadd.f32 %v807_v38, %v779_v51 }
  0xce   : > { %v837_v54 = vadd.f32 %v836_v44, %v808_v53 }
  0xd0   : > { %v866_v60 = vadd.f32 %v865_v50, %v837_v54 }
  0xd1   : > { %v780_v55 = vpop.f32.mrf.mxu1  ;;  %v867_v56 = vpop.f32.mrf.mxu0 }
  0xd2   : > { %v781_v57 = vadd.f32 %v780_v55, %v751_v40  ;;  %v817_v62 = vpop.f32.mrf.mxu2  ;;  %v885_v0 = vadd.f32 %v1670_v59, %v866_v60  ;;  %v846_v19 = vpop.f32.mrf.mxu3 }
  0xd4   : > { %v810_v61 = vadd.f32 %v809_v41, %v781_v57  ;;  %v912_v6 = vmax.f32 %v885_v0, 0.0 }
  0xd6   : > { %v839_v63 = vadd.f32 %v838_v48, %v810_v61 }
  0xd8   : > { %v868_v1 = vadd.f32 %v867_v56, %v839_v63 }
  0xd9   : > { %v783_v2 = vpop.f32.mrf.mxu1  ;;  %v870_v3 = vpop.f32.mrf.mxu0 }
  0xda   : > { %v886_v4 = vadd.f32 %v1670_v59, %v868_v1  ;;  %v784_v5 = vadd.f32 %v783_v2, %v754_v43  ;;  %v819_v11 = vpop.f32.mrf.mxu2  ;;  %v848_v32 = vpop.f32.mrf.mxu3 }
  0xdc   : > { %v913_v7 = vmax.f32 %v886_v4, 0.0  ;;  %v813_v8 = vadd.f32 %v812_v45, %v784_v5 }
  0xde   : > { %v1366_v10 = vpack.c.bf16 %v913_v7, %v912_v6  ;;  %v842_v12 = vadd.f32 %v841_v58, %v813_v8 }
  0xe0   : > { %1367 = vst [vmem:[%s1678_s11] sm:$0xff] %v1366_v10   ;;  %v871_v16 = vadd.f32 %v870_v3, %v842_v12 }
  0xe1   : > { %v785_v13 = vpop.f32.mrf.mxu1  ;;  %v872_v14 = vpop.f32.mrf.mxu0 }
  0xe2   : > { %v786_v15 = vadd.f32 %v785_v13, %v756_v47  ;;  %v887_v20 = vadd.f32 %v1670_v59, %v871_v16  ;;  %v822_v22 = vpop.f32.mrf.mxu2  ;;  %v851_v48 = vpop.f32.mrf.mxu3 }
  0xe4   : > { %v815_v17 = vadd.f32 %v814_v52, %v786_v15  ;;  %v914_v27 = vmax.f32 %v887_v20, 0.0 }
  0xe6   : > { %v844_v18 = vadd.f32 %v843_v9, %v815_v17 }
  0xe8   : > { %v873_v21 = vadd.f32 %v872_v14, %v844_v18 }
  0xe9   : > { %v788_v23 = vpop.f32.mrf.mxu1  ;;  %v875_v26 = vpop.f32.mrf.mxu0 }
  0xea   : > { %v888_v24 = vadd.f32 %v1670_v59, %v873_v21  ;;  %v789_v25 = vadd.f32 %v788_v23, %v759_v36  ;;  %v824_v35 = vpop.f32.mrf.mxu2  ;;  %v853_v58 = vpop.f32.mrf.mxu3 }
  0xec   : > { %v915_v28 = vmax.f32 %v888_v24, 0.0  ;;  %v818_v29 = vadd.f32 %v817_v62, %v789_v25 }
  0xee   : > { %v1371_v30 = vpack.c.bf16 %v915_v28, %v914_v27  ;;  %v847_v31 = vadd.f32 %v846_v19, %v818_v29 }
  0xf0   : > { %1383 = vst [vmem:[%s1678_s11 + $0x8] sm:$0xff] %v1371_v30   ;;  %v876_v37 = vadd.f32 %v875_v26, %v847_v31 }
  0xf1   : > { %v790_v33 = vpop.f32.mrf.mxu1  ;;  %v877_v40 = vpop.f32.mrf.mxu0 }
  0xf2   : > { %v791_v34 = vadd.f32 %v790_v33, %v1661_v39  ;;  %v889_v43 = vadd.f32 %v1670_v59, %v876_v37  ;;  %v880_v52 = vpop.f32.mrf.mxu2 }
  0xf4   : > { %v820_v38 = vadd.f32 %v819_v11, %v791_v34  ;;  %v916_v49 = vmax.f32 %v889_v43, 0.0 }
  0xf6   : > { %v849_v41 = vadd.f32 %v848_v32, %v820_v38 }
  0xf8   : > { %v878_v36 = vadd.f32 %v877_v40, %v849_v41 }
  0xf9   : > { %v793_v44 = vpop.f32.mrf.mxu1 }
  0xfa   : > { %v890_v45 = vadd.f32 %v1670_v59, %v878_v36  ;;  %v794_v47 = vadd.f32 %v793_v44, %v1663_v42  ;;  %v882_v61 = vpop.f32.mrf.mxu2 }
  0xfc   : > { %v917_v50 = vmax.f32 %v890_v45, 0.0  ;;  %v823_v51 = vadd.f32 %v822_v22, %v794_v47 }
  0xfe   : > { %v1376_v39 = vpack.c.bf16 %v917_v50, %v916_v49  ;;  %v852_v53 = vadd.f32 %v851_v48, %v823_v51 }
 0x100   : > { %1384 = vst [vmem:[%s1678_s11 + $0x10] sm:$0xff] %v1376_v39   ;;  %v881_v56 = vadd.f32 %v880_v52, %v852_v53 }
 0x101   : > { %v795_v54 = vpop.f32.mrf.mxu1 }
 0x102   : > { %v796_v55 = vadd.f32 %v795_v54, %v1665_v46  ;;  %v891_v62 = vadd.f32 %v1670_v59, %v881_v56 }
 0x104   : > { %v825_v57 = vadd.f32 %v824_v35, %v796_v55  ;;  %v918_v0 = vmax.f32 %v891_v62, 0.0 }
 0x106   : > { %v854_v60 = vadd.f32 %v853_v58, %v825_v57 }
 0x108   : > { %v883_v42 = vadd.f32 %v882_v61, %v854_v60 }
 0x10a   : > { %v892_v63 = vadd.f32 %v1670_v59, %v883_v42 }
 0x10c   : > { %v919_v1 = vmax.f32 %v892_v63, 0.0 }
 0x10e   : > { %v1381_v2 = vpack.c.bf16 %v919_v1, %v918_v0 }
 0x110   : > { %1385 = vst [vmem:[%s1678_s11 + $0x18] sm:$0xff] %v1381_v2  }
 0x111 PF: > { %s13_s14 = sadd.s32 1, %s1450_s14   ;;  %s1706_s12 = smov %s1446_s13 }
 0x112   : > { %p10_p5 = scmp.ge.s32.totalorder %s13_s14, 4   ;;  %s1707_s13 = smov %s1709_s15 }
 0x114   :  { %12 = sbr.rel (!%p10_p5) target bundleno = 2 (0x2), region = 76 }

</bundles_post_ra>
